<compile_context>
chip_gen: v7x
topology: tpu7x:2x2x1
jax: 0.10.0
libtpu: 0.0.40
codegen_flags: <defaults>
</compile_context>

<pallas_src>
import jax
import jax.numpy as jnp
from jax.experimental import pallas as pl
from jax.experimental.pallas import tpu as pltpu


def actor_softmax_kernel(x_ref, w1_ref, b1_ref, w2_ref, b2_ref, w3_ref, b3_ref,
                         out_ref):
    # fc1 + relu (bf16 dot operands, f32 accumulate / elementwise)
    x = x_ref[...].astype(jnp.bfloat16)
    h1 = jnp.dot(x, w1_ref[...], preferred_element_type=jnp.float32) + b1_ref[...]
    h1 = jnp.maximum(h1, 0.0)
    # fc2 + relu
    h2 = jnp.dot(h1.astype(jnp.bfloat16), w2_ref[...],
                 preferred_element_type=jnp.float32) + b2_ref[...]
    h2 = jnp.maximum(h2, 0.0)
    # fc3 + softmax over the feature axis. Padded output columns carry a bias
    # of ~-1e30 (set in the wrapper), so after exp they are exactly 0 and
    # contribute nothing to the row max / sum -> no mass leaks into padding.
    logits = jnp.dot(h2.astype(jnp.bfloat16), w3_ref[...],
                     preferred_element_type=jnp.float32) + b3_ref[...]
    m = jnp.max(logits, axis=1, keepdims=True)
    e = jnp.exp(logits - m)
    denom = jnp.sum(e, axis=1, keepdims=True)
    # Exact divide (not approx reciprocal): probabilities feed an RL policy.
    out_ref[...] = (e / denom).astype(out_ref.dtype)


def _round_up(n, m):
    return ((n + m - 1) // m) * m


def actor_softmax(x, w1, b1, w2, b2, w3, b3, *, block_rows=512):
    """x: (B, input_dim) f32 -> probs (B, output_dim) f32."""
    B, in_dim = x.shape
    hid1 = w1.shape[1]
    hid2 = w2.shape[1]
    out_dim = w3.shape[1]

    # ---- batch tiling ----------------------------------------------------
    # Big tiles amortize the ~0.35us/step pipeline overhead, but keep at
    # least 2 grid steps whenever B allows so the "parallel" batch axis can
    # occupy both TensorCores on v7x (no effect on v5e/v6e).
    if B <= 8:
        tm = _round_up(B, 8)
    else:
        tm = min(block_rows, _round_up(-(-B // 2), 8))
    n_blocks = pl.cdiv(B, tm)
    b_padded = n_blocks * tm
    if b_padded != B:
        x = jnp.pad(x, ((0, b_padded - B), (0, 0)))

    # ---- lane-dense fc3: pad output columns to a multiple of 128 ----------
    out_pad = _round_up(max(out_dim, 128), 128)
    w3p = jnp.zeros((hid2, out_pad), w3.dtype).at[:, :out_dim].set(w3)
    # Padded bias columns get a huge negative so exp(logit - max) == 0 there.
    b3p = jnp.full((1, out_pad), -1e30, jnp.float32).at[:, :out_dim].set(b3)

    # bf16 weights: native MXU dtype on v6e/v7x, halves weight DMA bytes and
    # resident VMEM. Biases stay f32 (added post-dot in f32).
    w1b = w1.astype(jnp.bfloat16)
    w2b = w2.astype(jnp.bfloat16)
    w3b = w3p.astype(jnp.bfloat16)

    # Advisory cost estimate so XLA can schedule/overlap around this call.
    flops = 2 * b_padded * (in_dim * hid1 + hid1 * hid2 + hid2 * out_pad)
    transcendentals = b_padded * out_pad  # one exp per output lane
    bytes_accessed = (
        b_padded * in_dim * 4                       # x
        + (in_dim * hid1 + hid1 * hid2 + hid2 * out_pad) * 2   # bf16 weights
        + (hid1 + hid2 + out_pad) * 4               # biases
        + b_padded * out_pad * 4                    # output
    )

    # Constant-index weights/biases: fetched once, keep a single VMEM buffer.
    wspec = lambda shape: pl.BlockSpec(shape, lambda i: (0, 0),
                                       pipeline_mode=pl.Buffered(1))

    out = pl.pallas_call(
        actor_softmax_kernel,
        out_shape=jax.ShapeDtypeStruct((b_padded, out_pad), jnp.float32),
        grid=(n_blocks,),
        in_specs=[
            # x: one batch tile per grid step (default double-buffering).
            pl.BlockSpec((tm, in_dim), lambda i: (i, 0)),
            wspec((in_dim, hid1)),
            wspec((1, hid1)),
            wspec((hid1, hid2)),
            wspec((1, hid2)),
            wspec((hid2, out_pad)),
            wspec((1, out_pad)),
        ],
        out_specs=pl.BlockSpec((tm, out_pad), lambda i: (i, 0)),
        compiler_params=pltpu.CompilerParams(
            dimension_semantics=("parallel",)),
        cost_estimate=pl.CostEstimate(
            flops=int(flops),
            transcendentals=int(transcendentals),
            bytes_accessed=int(bytes_accessed)),
    )(x, w1b, b1, w2b, b2, w3b, b3p)

    # Strip batch padding and the lane-padded (zero-probability) columns.
    return out[:B, :out_dim]


def init_linear_params(key, in_dim, out_dim):
    """Deterministic PyTorch-style uniform init; weight stored as (in, out)."""
    kw, kb = jax.random.split(key)
    bound = 1.0 / jnp.sqrt(jnp.float32(in_dim))
    w = jax.random.uniform(kw, (in_dim, out_dim), jnp.float32, -bound, bound)
    b = jax.random.uniform(kb, (1, out_dim), jnp.float32, -bound, bound)
    return w, b


def reference_forward(x, w1, b1, w2, b2, w3, b3):
    h1 = jnp.maximum(x @ w1 + b1, 0.0)
    h2 = jnp.maximum(h1 @ w2 + b2, 0.0)
    logits = h2 @ w3 + b3
    return jax.nn.softmax(logits, axis=1)


if __name__ == "__main__":
    # Small shapes consistent with the module (hidden_dim=256 is the module
    # default). Batch sized to exercise a multi-step (2-step) grid.
    batch, input_dim, hidden_dim, output_dim = 384, 16, 256, 8

    key = jax.random.PRNGKey(0)
    kx, k1, k2, k3 = jax.random.split(key, 4)

    x = jax.random.normal(kx, (batch, input_dim), jnp.float32)
    w1, b1 = init_linear_params(k1, input_dim, hidden_dim)
    w2, b2 = init_linear_params(k2, hidden_dim, hidden_dim)
    w3, b3 = init_linear_params(k3, hidden_dim, output_dim)

    # jit the whole forward: weight casts / padding fold into the graph
    # instead of running as separate eager HBM round-trips.
    forward = jax.jit(actor_softmax)

    probs = forward(x, w1, b1, w2, b2, w3, b3)
    probs = jax.block_until_ready(probs)

    ref = reference_forward(x, w1, b1, w2, b2, w3, b3)
    assert probs.shape == (batch, output_dim)
    # Exact divide in the softmax epilogue -> rows sum to 1 tightly.
    assert jnp.allclose(jnp.sum(probs, axis=1), 1.0, atol=1e-3)
    # bf16 dot operands vs. pure-f32 reference.
    assert jnp.allclose(probs, ref, atol=3e-2, rtol=3e-2)

    print("KERNEL_OK")
</pallas_src>

<mosaic_0001>
module attributes {stable_mosaic.version = 11 : i64} {
  func.func @actor_softmax_kernel(%arg0: i32, %arg1: memref<192x16xf32, #tpu.memory_space<vmem>>, %arg2: memref<16x256xbf16, #tpu.memory_space<vmem>>, %arg3: memref<1x256xf32, #tpu.memory_space<vmem>>, %arg4: memref<256x256xbf16, #tpu.memory_space<vmem>>, %arg5: memref<1x256xf32, #tpu.memory_space<vmem>>, %arg6: memref<256x128xbf16, #tpu.memory_space<vmem>>, %arg7: memref<1x128xf32, #tpu.memory_space<vmem>>, %arg8: memref<192x128xf32, #tpu.memory_space<vmem>>) attributes {dimension_semantics = [#tpu.dimension_semantics<parallel>], iteration_bounds = array<i64: 2>, scalar_prefetch = 0 : i64, scratch_operands = 0 : i64, tpu.core_type = #tpu.core_type<tc>, window_params = [{transform_indices = @transform_0, window_bounds = array<i64: 192, 16>}, {pipeline_mode = #tpu.pipeline_mode<synchronous>, transform_indices = @transform_1, window_bounds = array<i64: 16, 256>}, {pipeline_mode = #tpu.pipeline_mode<synchronous>, transform_indices = @transform_2, window_bounds = array<i64: 1, 256>}, {pipeline_mode = #tpu.pipeline_mode<synchronous>, transform_indices = @transform_3, window_bounds = array<i64: 256, 256>}, {pipeline_mode = #tpu.pipeline_mode<synchronous>, transform_indices = @transform_4, window_bounds = array<i64: 1, 256>}, {pipeline_mode = #tpu.pipeline_mode<synchronous>, transform_indices = @transform_5, window_bounds = array<i64: 256, 128>}, {pipeline_mode = #tpu.pipeline_mode<synchronous>, transform_indices = @transform_6, window_bounds = array<i64: 1, 128>}, {transform_indices = @transform_7, window_bounds = array<i64: 192, 128>}]} {
    %c0 = arith.constant 0 : index
    %c0_0 = arith.constant 0 : index
    %0 = vector.load %arg1[%c0, %c0_0] : memref<192x16xf32, #tpu.memory_space<vmem>>, vector<192x16xf32>
    %1 = arith.truncf %0 : vector<192x16xf32> to vector<192x16xbf16>
    %c0_1 = arith.constant 0 : index
    %c0_2 = arith.constant 0 : index
    %2 = vector.load %arg2[%c0_1, %c0_2] : memref<16x256xbf16, #tpu.memory_space<vmem>>, vector<16x256xbf16>
    %cst = arith.constant dense<0.000000e+00> : vector<192x256xf32>
    %3 = tpu.matmul %1, %2, %cst {dimension_numbers = #tpu.dot_dimension_numbers<[1], [0], [0], [1], [0, 0, 1, 1], [], []>} : vector<192x16xbf16>, vector<16x256xbf16>, vector<192x256xf32> -> vector<192x256xf32>
    %c0_3 = arith.constant 0 : index
    %c0_4 = arith.constant 0 : index
    %4 = vector.load %arg3[%c0_3, %c0_4] : memref<1x256xf32, #tpu.memory_space<vmem>>, vector<1x256xf32>
    %5 = vector.broadcast %4 : vector<1x256xf32> to vector<192x256xf32>
    %6 = arith.addf %3, %5 : vector<192x256xf32>
    %cst_5 = arith.constant 0.000000e+00 : f32
    %7 = vector.broadcast %cst_5 : f32 to vector<192x256xf32>
    %8 = arith.maximumf %6, %7 : vector<192x256xf32>
    %9 = arith.truncf %8 : vector<192x256xf32> to vector<192x256xbf16>
    %c0_6 = arith.constant 0 : index
    %c0_7 = arith.constant 0 : index
    %10 = vector.load %arg4[%c0_6, %c0_7] : memref<256x256xbf16, #tpu.memory_space<vmem>>, vector<256x256xbf16>
    %cst_8 = arith.constant dense<0.000000e+00> : vector<192x256xf32>
    %11 = tpu.matmul %9, %10, %cst_8 {dimension_numbers = #tpu.dot_dimension_numbers<[1], [0], [0], [1], [0, 0, 1, 1], [], []>} : vector<192x256xbf16>, vector<256x256xbf16>, vector<192x256xf32> -> vector<192x256xf32>
    %c0_9 = arith.constant 0 : index
    %c0_10 = arith.constant 0 : index
    %12 = vector.load %arg5[%c0_9, %c0_10] : memref<1x256xf32, #tpu.memory_space<vmem>>, vector<1x256xf32>
    %13 = vector.broadcast %12 : vector<1x256xf32> to vector<192x256xf32>
    %14 = arith.addf %11, %13 : vector<192x256xf32>
    %cst_11 = arith.constant 0.000000e+00 : f32
    %15 = vector.broadcast %cst_11 : f32 to vector<192x256xf32>
    %16 = arith.maximumf %14, %15 : vector<192x256xf32>
    %17 = arith.truncf %16 : vector<192x256xf32> to vector<192x256xbf16>
    %c0_12 = arith.constant 0 : index
    %c0_13 = arith.constant 0 : index
    %18 = vector.load %arg6[%c0_12, %c0_13] : memref<256x128xbf16, #tpu.memory_space<vmem>>, vector<256x128xbf16>
    %cst_14 = arith.constant dense<0.000000e+00> : vector<192x128xf32>
    %19 = tpu.matmul %17, %18, %cst_14 {dimension_numbers = #tpu.dot_dimension_numbers<[1], [0], [0], [1], [0, 0, 1, 1], [], []>} : vector<192x256xbf16>, vector<256x128xbf16>, vector<192x128xf32> -> vector<192x128xf32>
    %c0_15 = arith.constant 0 : index
    %c0_16 = arith.constant 0 : index
    %20 = vector.load %arg7[%c0_15, %c0_16] : memref<1x128xf32, #tpu.memory_space<vmem>>, vector<1x128xf32>
    %21 = vector.broadcast %20 : vector<1x128xf32> to vector<192x128xf32>
    %22 = arith.addf %19, %21 : vector<192x128xf32>
    %cst_17 = arith.constant dense<0xFF800000> : vector<192xf32>
    %23 = vector.multi_reduction <maximumf>, %22, %cst_17 [1] : vector<192x128xf32> to vector<192xf32>
    %24 = vector.shape_cast %23 : vector<192xf32> to vector<192x1xf32>
    %25 = vector.broadcast %24 : vector<192x1xf32> to vector<192x128xf32>
    %26 = arith.subf %22, %25 : vector<192x128xf32>
    %27 = math.exp %26 : vector<192x128xf32>
    %cst_18 = arith.constant dense<0.000000e+00> : vector<192xf32>
    %28 = vector.multi_reduction <add>, %27, %cst_18 [1] : vector<192x128xf32> to vector<192xf32>
    %29 = vector.shape_cast %28 : vector<192xf32> to vector<192x1xf32>
    %30 = vector.broadcast %29 : vector<192x1xf32> to vector<192x128xf32>
    %31 = arith.divf %27, %30 : vector<192x128xf32>
    %c0_19 = arith.constant 0 : index
    %c0_20 = arith.constant 0 : index
    %32 = vector.load %arg8[%c0_19, %c0_20] : memref<192x128xf32, #tpu.memory_space<vmem>>, vector<192x128xf32>
    tpu.vector_store %arg8[%c0_19, %c0_20], %31 {strides = array<i32>} : memref<192x128xf32, #tpu.memory_space<vmem>>, vector<192x128xf32>,
    return
  }
  func.func @transform_0(%arg0: i32) -> (i32, i32) {
    %c0_i32 = arith.constant 0 : i32
    %c0_i32_0 = arith.constant 0 : i32
    return %arg0, %c0_i32 : i32, i32
  }
  func.func @transform_1(%arg0: i32) -> (i32, i32) {
    %c0_i32 = arith.constant 0 : i32
    %c0_i32_0 = arith.constant 0 : i32
    %c0_i32_1 = arith.constant 0 : i32
    return %c0_i32, %c0_i32_0 : i32, i32
  }
  func.func @transform_2(%arg0: i32) -> (i32, i32) {
    %c0_i32 = arith.constant 0 : i32
    %c0_i32_0 = arith.constant 0 : i32
    %c0_i32_1 = arith.constant 0 : i32
    return %c0_i32, %c0_i32_0 : i32, i32
  }
  func.func @transform_3(%arg0: i32) -> (i32, i32) {
    %c0_i32 = arith.constant 0 : i32
    %c0_i32_0 = arith.constant 0 : i32
    %c0_i32_1 = arith.constant 0 : i32
    return %c0_i32, %c0_i32_0 : i32, i32
  }
  func.func @transform_4(%arg0: i32) -> (i32, i32) {
    %c0_i32 = arith.constant 0 : i32
    %c0_i32_0 = arith.constant 0 : i32
    %c0_i32_1 = arith.constant 0 : i32
    return %c0_i32, %c0_i32_0 : i32, i32
  }
  func.func @transform_5(%arg0: i32) -> (i32, i32) {
    %c0_i32 = arith.constant 0 : i32
    %c0_i32_0 = arith.constant 0 : i32
    %c0_i32_1 = arith.constant 0 : i32
    return %c0_i32, %c0_i32_0 : i32, i32
  }
  func.func @transform_6(%arg0: i32) -> (i32, i32) {
    %c0_i32 = arith.constant 0 : i32
    %c0_i32_0 = arith.constant 0 : i32
    %c0_i32_1 = arith.constant 0 : i32
    return %c0_i32, %c0_i32_0 : i32, i32
  }
  func.func @transform_7(%arg0: i32) -> (i32, i32) {
    %c0_i32 = arith.constant 0 : i32
    %c0_i32_0 = arith.constant 0 : i32
    return %arg0, %c0_i32 : i32, i32
  }
}

</mosaic_0001>

<bundles_post_ra>
// kernel: actor_softmax.1
= control target key start
LH: loop header
LB: loop body
LE: loop exit
PB: predicated region body
PF: predicated region fallthrough
CT: control target
= control target key end

     0   :  { %s1977_s24 = smov 0   ;;  %s2588_s0 = inlined_call_operand.vmem [shape: f32[384,16], index: 0, kind: input, shape index: {}]   ;;  %s2589_s1 = inlined_call_operand.vmem [shape: bf16[16,256], index: 1, kind: input, shape index: {}]   ;;  %s2590_s2 = inlined_call_operand.vmem [shape: f32[1,256], index: 2, kind: input, shape index: {}]   ;;  %s2591_s3 = inlined_call_operand.vmem [shape: bf16[256,256], index: 3, kind: input, shape index: {}]   ;;  %s2592_s4 = inlined_call_operand.vmem [shape: f32[1,256], index: 4, kind: input, shape index: {}]   ;;  %s2593_s5 = inlined_call_operand.vmem [shape: bf16[256,128], index: 5, kind: input, shape index: {}]   ;;  %s2594_s6 = inlined_call_operand.vmem [shape: f32[1,128], index: 6, kind: input, shape index: {}]   ;;  %s2595_s7 = inlined_call_operand.vmem [shape: f32[384,128], index: 7, kind: output, shape index: {}]  }
   0x1 LB: > { %s1594_s25 = sadd.s32 4294967295, %s1934_s24   ;;  %p1598_p0 = scmp.ge.s32.totalorder %s1934_s24, 1  ;;  %s1934_s24 = sphi %s1977_s24, %s17_s24  }
   0x2   : > { %p238_p1 = scmp.lt.s32.totalorder %s1934_s24, 3 }
   0x4   : > { %p239_p2 = pnand %p1598_p0, %p238_p1 }
   0x5   : > { %v1765_v0 = vld [vmem:[%s2589_s1 + $0x4] ss:$8 sps:$4 sm:$0xff] (!%p239_p2)   ;;  %s270_s28 = smul.u32 (!%p239_p2), 24, %s1594_s25  ;;  %v1767_v1 = vld [vmem:[%s2589_s1] ss:$8 sps:$4 sm:$0xff] (!%p239_p2)   ;;  %v1936_v2 = vmov (!%p239_p2), 0  }
   0x6   : > { %242 = sbr.rel (%p239_p2) target bundleno = 1083 (0x43b), region = 48  ;;  %412 = vmatprep.mubr.bf16.mxu0 (!%p239_p2), %v1936_v2  ;;  %452 = vmatprep.mubr.bf16.mxu1 (!%p239_p2), %v1936_v2  ;;  %v1770_v3 = vld [vmem:[%s2591_s3 + $0x4] ss:$8 sps:$4 sm:$0xff] (!%p239_p2)   ;;  %vm343_vm0 = vcmask (!%p239_p2), 130048   ;;  %v1768_v9 = vld [vmem:[%s2591_s3] ss:$8 sps:$4 sm:$0xff] (!%p239_p2)  }
   0x7   : > { %380 = vmatprep.subr.bf16.mxu0 (!%p239_p2), %v1765_v0  ;;  %p271_p3 = scmp.lt.s32.totalorder (!%p239_p2), %s270_s28, 47  ;;  %1754 = vmatprep.subr.bf16.mxu1 (!%p239_p2), %v1765_v0  ;;  %v1773_v13 = vld [vmem:[%s2591_s3 + $0x14] ss:$8 sps:$4 sm:$0xff] (!%p239_p2)   ;;  %v1771_v17 = vld [vmem:[%s2591_s3 + $0x10] ss:$8 sps:$4 sm:$0xff] (!%p239_p2)  }
   0x8   : > { %381 = vmatpush1.bf16.msra.mxu0 (!%p239_p2), %v1767_v1  ;;  %1755 = vmatpush1.bf16.msra.mxu1 (!%p239_p2), %v1767_v1  ;;  %v1776_v18 = vld [vmem:[%s2591_s3 + $0x24] ss:$8 sps:$4 sm:$0xff] (!%p239_p2)   ;;  %v1774_v20 = vld [vmem:[%s2591_s3 + $0x20] ss:$8 sps:$4 sm:$0xff] (!%p239_p2)   ;;  %v1779_v22 = vld [vmem:[%s2591_s3 + $0x34] ss:$8 sps:$4 sm:$0xff] (!%p239_p2)  }
   0x9   : > { %809 = vmatprep.subr.bf16.mxu1 (!%p239_p2), %v1770_v3  ;;  %v1777_v24 = vld [vmem:[%s2591_s3 + $0x30] ss:$8 sps:$4 sm:$0xff] (!%p239_p2)   ;;  %v1782_v28 = vld [vmem:[%s2591_s3 + $0x44] ss:$8 sps:$4 sm:$0xff] (!%p239_p2)   ;;  %v1780_v30 = vld [vmem:[%s2591_s3 + $0x40] ss:$8 sps:$4 sm:$0xff] (!%p239_p2)  }
   0xa   : > { %v1785_v33 = vld [vmem:[%s2591_s3 + $0x54] ss:$8 sps:$4 sm:$0xff] (!%p239_p2)   ;;  %v1783_v36 = vld [vmem:[%s2591_s3 + $0x50] ss:$8 sps:$4 sm:$0xff] (!%p239_p2)   ;;  %v1788_v37 = vld [vmem:[%s2591_s3 + $0x64] ss:$8 sps:$4 sm:$0xff] (!%p239_p2)  }
   0xb   : > { %v1786_v39 = vld [vmem:[%s2591_s3 + $0x60] ss:$8 sps:$4 sm:$0xff] (!%p239_p2)   ;;  %v1791_v41 = vld [vmem:[%s2591_s3 + $0x74] ss:$8 sps:$4 sm:$0xff] (!%p239_p2)   ;;  %v1789_v44 = vld [vmem:[%s2591_s3 + $0x70] ss:$8 sps:$4 sm:$0xff] (!%p239_p2)  }
   0xc   : > { %v1794_v45 = vld [vmem:[%s2591_s3 + $0x84] ss:$8 sps:$4 sm:$0xff] (!%p239_p2)   ;;  %v1792_v47 = vld [vmem:[%s2591_s3 + $0x80] ss:$8 sps:$4 sm:$0xff] (!%p239_p2)   ;;  %v1797_v48 = vld [vmem:[%s2591_s3 + $0x94] ss:$8 sps:$4 sm:$0xff] (!%p239_p2)  }
   0xd   : > { %s2597_s28 = smov (!%p271_p3, %s270_s28), 47  ;;  %v1795_v51 = vld [vmem:[%s2591_s3 + $0x90] ss:$8 sps:$4 sm:$0xff]   ;;  %v1800_v52 = vld [vmem:[%s2591_s3 + $0xa4] ss:$8 sps:$4 sm:$0xff]  }
   0xe   : > { %s1599_s10 = sshll.u32 %s2597_s28, 3  ;;  %v1798_v54 = vld [vmem:[%s2591_s3 + $0xa0] ss:$8 sps:$4 sm:$0xff]   ;;  %v1803_v55 = vld [vmem:[%s2591_s3 + $0xb4] ss:$8 sps:$4 sm:$0xff]  }
   0xf   : > { %s2004_s13 = scalar_lea.vmem %s2588_s0, %s1599_s10  ;;  %v1801_v58 = vld [vmem:[%s2591_s3 + $0xb0] ss:$8 sps:$4 sm:$0xff]   ;;  %v1806_v59 = vld [vmem:[%s2591_s3 + $0xc4] ss:$8 sps:$4 sm:$0xff]   ;;  %v1804_v61 = vld [vmem:[%s2591_s3 + $0xc0] ss:$8 sps:$4 sm:$0xff]   ;;  %s2535_s18 = scalar_lea.vmem %s2595_s7, %s1599_s10 }
  0x10   : > { %v283_v4 = vld [vmem:[%s2004_s13] sm:$0xff]  ;;  %v284_v5 = vld [vmem:[%s2004_s13 + $0x8] sm:$0xff]  ;;  %v285_v10 = vld [vmem:[%s2004_s13 + $0x10] sm:$0xff] }
  0x11   : > { %v307_v6 = vpack.c.bf16 %v284_v5, %v283_v4  ;;  %v291_v7 = vld [vmem:[%s2004_s13 + $0x40] sm:$0xff]  ;;  %v292_v8 = vld [vmem:[%s2004_s13 + $0x48] sm:$0xff]  ;;  %v286_v11 = vld [vmem:[%s2004_s13 + $0x18] sm:$0xff] }
  0x12   : > { %v311_v12 = vpack.c.bf16 %v292_v8, %v291_v7  ;;  %v308_v14 = vpack.c.bf16 %v286_v11, %v285_v10  ;;  %v293_v15 = vld [vmem:[%s2004_s13 + $0x50] sm:$0xff]  ;;  %v294_v16 = vld [vmem:[%s2004_s13 + $0x58] sm:$0xff]  ;;  %v287_v21 = vld [vmem:[%s2004_s13 + $0x20] sm:$0xff] }
  0x13   : > { %1603 = vmatmul.mubr.msk.bf16.vlgmr.msra.gmra.mrb[0].mxu0 %vm343_vm0, %v307_v6  ;;  %v312_v19 = vpack.c.bf16 %v294_v16, %v293_v15  ;;  %v288_v23 = vld [vmem:[%s2004_s13 + $0x28] sm:$0xff]  ;;  %v295_v26 = vld [vmem:[%s2004_s13 + $0x60] sm:$0xff]  ;;  %v289_v31 = vld [vmem:[%s2004_s13 + $0x30] sm:$0xff]  ;;  %v323_v16 = vlaneseq }
  0x14   : > { %422 = vmatprep.mubr.bf16.mxu0 %v1936_v2  ;;  %1607 = vmatmul.mubr.msk.bf16.vlgmr.msra.gmra.mrb[0].mxu1 %vm343_vm0, %v311_v12  ;;  %v309_v25 = vpack.c.bf16 %v288_v23, %v287_v21  ;;  %v296_v27 = vld [vmem:[%s2004_s13 + $0x68] sm:$0xff]  ;;  %v290_v32 = vld [vmem:[%s2004_s13 + $0x38] sm:$0xff]  ;;  %v297_v34 = vld [vmem:[%s2004_s13 + $0x70] sm:$0xff] }
  0x15   : > { %462 = vmatprep.mubr.bf16.mxu1 %v1936_v2  ;;  %810 = vmatpush1.bf16.msra.mxu1 %v1768_v9  ;;  %v313_v29 = vpack.c.bf16 %v296_v27, %v295_v26  ;;  %v298_v35 = vld [vmem:[%s2004_s13 + $0x78] sm:$0xff]  ;;  %v310_v38 = vpack.c.bf16 %v290_v32, %v289_v31  ;;  %v299_v42 = vld [vmem:[%s2004_s13 + $0x80] sm:$0xff]  ;;  %v300_v43 = vld [vmem:[%s2004_s13 + $0x88] sm:$0xff] }
  0x16   : > { %811 = vmatprep.subr.bf16.mxu1 %v1773_v13  ;;  %v314_v40 = vpack.c.bf16 %v298_v35, %v297_v34  ;;  %v315_v46 = vpack.c.bf16 %v300_v43, %v299_v42  ;;  %v301_v49 = vld [vmem:[%s2004_s13 + $0x90] sm:$0xff]  ;;  %v302_v50 = vld [vmem:[%s2004_s13 + $0x98] sm:$0xff]  ;;  %v303_v56 = vld [vmem:[%s2004_s13 + $0xa0] sm:$0xff] }
  0x17   : > { %v316_v53 = vpack.c.bf16 %v302_v50, %v301_v49  ;;  %v304_v57 = vld [vmem:[%s2004_s13 + $0xa8] sm:$0xff]  ;;  %v1809_v62 = vld [vmem:[%s2591_s3 + $0xd4] ss:$8 sps:$4 sm:$0xff]   ;;  %v1807_v1 = vld [vmem:[%s2591_s3 + $0xd0] ss:$8 sps:$4 sm:$0xff]  }
  0x18   : > { %v317_v60 = vpack.c.bf16 %v304_v57, %v303_v56  ;;  %v305_v63 = vld [vmem:[%s2004_s13 + $0xb0] sm:$0xff]  ;;  %v306_v0 = vld [vmem:[%s2004_s13 + $0xb8] sm:$0xff]  ;;  %v1812_v4 = vld [vmem:[%s2591_s3 + $0xe4] ss:$8 sps:$4 sm:$0xff]  }
  0x19   : > { %812 = vmatpush1.bf16.msra.mxu1 %v1771_v17  ;;  %v318_v3 = vpack.c.bf16 %v306_v0, %v305_v63  ;;  %v1815_v5 = vld [vmem:[%s2591_s3 + $0xf4] ss:$8 sps:$4 sm:$0xff]   ;;  %v1813_v6 = vld [vmem:[%s2591_s3 + $0xf0] ss:$8 sps:$4 sm:$0xff]   ;;  %v1816_v7 = vld [vmem:[%s2593_s5 + $0x40] sm:$0xff]  }
  0x1a   : > { %813 = vmatprep.subr.bf16.mxu1 %v1776_v18  ;;  %v1817_v8 = vld [vmem:[%s2593_s5] sm:$0xff]   ;;  %v1818_v9 = vld [vmem:[%s2593_s5 + $0x48] sm:$0xff]   ;;  %1666 = vmatprep.subr.bf16.mxu0 %v1816_v7  ;;  %v1820_v11 = vld [vmem:[%s2593_s5 + $0x50] sm:$0xff]  }
  0x1b   : > { %1604 = vmatmul.mubr.msk.bf16.gmra.mrb[4].mxu0 %vm343_vm0, %v308_v14  ;;  %v1819_v10 = vld [vmem:[%s2593_s5 + $0x8] sm:$0xff]   ;;  %v1821_v12 = vld [vmem:[%s2593_s5 + $0x10] sm:$0xff]   ;;  %v1822_v13 = vld [vmem:[%s2593_s5 + $0x58] sm:$0xff]  }
  0x1c   : > { %432 = vmatprep.mubr.bf16.mxu0 %v1936_v2  ;;  %1608 = vmatmul.mubr.msk.bf16.gmra.mrb[4].mxu1 %vm343_vm0, %v312_v19  ;;  %v1823_v14 = vld [vmem:[%s2593_s5 + $0x18] sm:$0xff]   ;;  %v1824_v15 = vld [vmem:[%s2593_s5 + $0x60] sm:$0xff]   ;;  %v1826_v18 = vld [vmem:[%s2593_s5 + $0x68] sm:$0xff]   ;;  %v2178_v19 = vshrl.u32 %v323_v16, 7 }
  0x1d   : > { %472 = vmatprep.mubr.bf16.mxu1 %v1936_v2  ;;  %814 = vmatpush1.bf16.msra.mxu1 %v1774_v20  ;;  %v1825_v17 = vld [vmem:[%s2593_s5 + $0x20] sm:$0xff]   ;;  %v1827_v20 = vld [vmem:[%s2593_s5 + $0x28] sm:$0xff]  }
  0x1e   : > { %815 = vmatprep.subr.bf16.mxu1 %v1779_v22  ;;  %1667 = vmatpush3.bf16.msra.mxu0 %v1817_v8  ;;  %v325_v21 = vsub.s32 0, %v2178_v19  ;;  %v321_v22 = vld [vmem:[%s2590_s2] sm:$0x3]  ;;  %v329_v23 = vsub.s32 1, %v2178_v19 }
  0x1f   : > { %1668 = vmatprep.subr.bf16.mxu0 %v1818_v9 }
  0x21   : > { %816 = vmatpush1.bf16.msra.mxu1 %v1777_v24  ;;  %v2190_v24 = vrot.slane %v321_v22, %v325_v21 }
  0x22   : > { %817 = vmatprep.subr.bf16.mxu1 %v1782_v28  ;;  %1669 = vmatpush3.bf16.msra.mxu0 %v1819_v10 }
  0x23   : > { %1605 = vmatmul.mubr.msk.bf16.gmra.mrb[8].mxu0 %vm343_vm0, %v309_v25  ;;  %1670 = vmatprep.subr.bf16.mxu0 %v1820_v11  ;;  %v2194_v25 = vrot.slane %v321_v22, %v329_v23 }
  0x24   : > { %442 = vmatprep.mubr.bf16.mxu0 %v1936_v2  ;;  %1609 = vmatmul.mubr.msk.bf16.gmra.mrb[8].mxu1 %vm343_vm0, %v313_v29 }
  0x25   : > { %482 = vmatprep.mubr.bf16.mxu1 %v1936_v2  ;;  %818 = vmatpush1.bf16.msra.mxu1 %v1780_v30 }
  0x26   : > { %819 = vmatprep.subr.bf16.mxu1 %v1785_v33  ;;  %1671 = vmatpush3.bf16.msra.mxu0 %v1821_v12 }
  0x27   : > { %1672 = vmatprep.subr.bf16.mxu0 %v1822_v13 }
  0x29   : > { %820 = vmatpush1.bf16.msra.mxu1 %v1783_v36 }
  0x2a   : > { %821 = vmatprep.subr.bf16.mxu1 %v1788_v37  ;;  %1673 = vmatpush3.bf16.msra.mxu0 %v1823_v14 }
  0x2b   : > { %1606 = vmatmul.mubr.msk.bf16.gmra.mrb[12].mxu0 %vm343_vm0, %v310_v38  ;;  %1674 = vmatprep.subr.bf16.mxu0 %v1824_v15 }
  0x2c   : > { %1610 = vmatmul.mubr.msk.bf16.gmra.mrb[12].mxu1 %vm343_vm0, %v314_v40 }
  0x2d   : > { %492 = vmatprep.mubr.bf16.mxu1 %v1936_v2  ;;  %822 = vmatpush1.bf16.msra.mxu1 %v1786_v39 }
  0x2e   : > { %823 = vmatprep.subr.bf16.mxu1 %v1791_v41  ;;  %1675 = vmatpush3.bf16.msra.mxu0 %v1825_v17 }
  0x2f   : > { %1676 = vmatprep.subr.bf16.mxu0 %v1826_v18 }
  0x31   : > { %824 = vmatpush1.bf16.msra.mxu1 %v1789_v44 }
  0x32   : > { %825 = vmatprep.subr.bf16.mxu1 %v1794_v45  ;;  %1677 = vmatpush3.bf16.msra.mxu0 %v1827_v20 }
  0x34   : > { %1611 = vmatmul.mubr.msk.bf16.gmra.mrb[16].mxu1 %vm343_vm0, %v315_v46 }
  0x35   : > { %502 = vmatprep.mubr.bf16.mxu1 %v1936_v2  ;;  %826 = vmatpush1.bf16.msra.mxu1 %v1792_v47 }
  0x36   : > { %827 = vmatprep.subr.bf16.mxu1 %v1797_v48 }
  0x39   : > { %828 = vmatpush1.bf16.msra.mxu1 %v1795_v51 }
  0x3a   : > { %829 = vmatprep.subr.bf16.mxu1 %v1800_v52 }
  0x3c   : > { %1612 = vmatmul.mubr.msk.bf16.gmra.mrb[20].mxu1 %vm343_vm0, %v316_v53 }
  0x3d   : > { %512 = vmatprep.mubr.bf16.mxu1 %v1936_v2  ;;  %830 = vmatpush1.bf16.msra.mxu1 %v1798_v54 }
  0x3e   : > { %831 = vmatprep.subr.bf16.mxu1 %v1803_v55 }
  0x41   : > { %832 = vmatpush1.bf16.msra.mxu1 %v1801_v58 }
  0x42   : > { %833 = vmatprep.subr.bf16.mxu1 %v1806_v59 }
  0x44   : > { %1613 = vmatmul.mubr.msk.bf16.gmra.mrb[24].mxu1 %vm343_vm0, %v317_v60 }
  0x45   : > { %522 = vmatprep.mubr.bf16.mxu1 %v1936_v2  ;;  %834 = vmatpush1.bf16.msra.mxu1 %v1804_v61  ;;  %v1810_v2 = vld [vmem:[%s2591_s3 + $0xe0] ss:$8 sps:$4 sm:$0xff]  }
  0x46   : > { %835 = vmatprep.subr.bf16.mxu1 %v1809_v62 }
  0x49   : > { %836 = vmatpush1.bf16.msra.mxu1 %v1807_v1 }
  0x4a   : > { %837 = vmatprep.subr.bf16.mxu1 %v1812_v4 }
  0x4c   : > { %1614 = vmatmul.mubr.msk.bf16.gmra.mrb[28].mxu1 %vm343_vm0, %v318_v3 }
  0x4d   : > { %838 = vmatpush1.bf16.msra.mxu1 %v1810_v2 }
  0x4e   : > { %839 = vmatprep.subr.bf16.mxu1 %v1815_v5 }
  0x51   : > { %840 = vmatpush1.bf16.msra.mxu1 %v1813_v6 }
  0xe6   : > { %v414_v26 = vpop.f32.mrb[0].mxu0 }
  0xe7   : > { %v415_v27 = vadd.f32 %v414_v26, %v2190_v24  ;;  %v416_v28 = vpop.f32.mrb[1].mxu0  ;;  %v454_v33 = vpop.f32.mrb[0].mxu1 }
  0xe8   : > { %v417_v29 = vadd.f32 %v416_v28, %v2194_v25  ;;  %v418_v30 = vpop.f32.mrb[2].mxu0  ;;  %v455_v35 = vadd.f32 %v454_v33, %v2190_v24  ;;  %v456_v36 = vpop.f32.mrb[1].mxu1 }
  0xe9   : > { %v419_v31 = vadd.f32 %v418_v30, %v2190_v24  ;;  %v420_v32 = vpop.f32.mrb[3].mxu0  ;;  %v533_v37 = vmax.f32 %v415_v27, 0.0  ;;  %v457_v39 = vadd.f32 %v456_v36, %v2194_v25  ;;  %v458_v40 = vpop.f32.mrb[2].mxu1 }
  0xea   : > { %v421_v34 = vadd.f32 %v420_v32, %v2194_v25  ;;  %v534_v41 = vmax.f32 %v417_v29, 0.0  ;;  %v549_v43 = vmax.f32 %v455_v35, 0.0  ;;  %v459_v44 = vadd.f32 %v458_v40, %v2190_v24  ;;  %v460_v45 = vpop.f32.mrb[3].mxu1 }
  0xeb   : > { %v535_v38 = vmax.f32 %v419_v31, 0.0  ;;  %v550_v47 = vmax.f32 %v457_v39, 0.0  ;;  %v461_v48 = vadd.f32 %v460_v45, %v2194_v25 }
  0xec   : > { %v536_v42 = vmax.f32 %v421_v34, 0.0  ;;  %v551_v51 = vmax.f32 %v459_v44, 0.0 }
  0xed   : > { %v581_v46 = vpack.c.bf16 %v535_v38, %v533_v37  ;;  %v552_v54 = vmax.f32 %v461_v48, 0.0 }
  0xee   : > { %v582_v49 = vpack.c.bf16 %v536_v42, %v534_v41  ;;  %v424_v50 = vpop.f32.mrb[4].mxu0  ;;  %v2206_v57 = vpack.c.bf16 %v551_v51, %v549_v43 }
  0xef   : > { %v425_v52 = vadd.f32 %v424_v50, %v2190_v24  ;;  %v426_v53 = vpop.f32.mrb[5].mxu0  ;;  %v2209_v60 = vpack.c.bf16 %v552_v54, %v550_v47  ;;  %v464_v61 = vpop.f32.mrb[4].mxu1 }
  0xf0   : > { %v427_v55 = vadd.f32 %v426_v53, %v2194_v25  ;;  %v428_v56 = vpop.f32.mrb[6].mxu0  ;;  %841 = vmatprep.mubr.bf16.mxu1 %v582_v49  ;;  %v465_v63 = vadd.f32 %v464_v61, %v2190_v24  ;;  %v466_v0 = vpop.f32.mrb[5].mxu1 }
  0xf1   : > { %v429_v58 = vadd.f32 %v428_v56, %v2190_v24  ;;  %v430_v59 = vpop.f32.mrb[7].mxu0  ;;  %842 = vmatmul.mubr.bf16.vlgmr.msra.gmra.mrb[32].mxu1 %v581_v46  ;;  %v537_v1 = vmax.f32 %v425_v52, 0.0  ;;  %v467_v4 = vadd.f32 %v466_v0, %v2194_v25  ;;  %v468_v2 = vpop.f32.mrb[6].mxu1 }
  0xf2   : > { %v431_v62 = vadd.f32 %v430_v59, %v2194_v25  ;;  %v538_v5 = vmax.f32 %v427_v55, 0.0  ;;  %v553_v7 = vmax.f32 %v465_v63, 0.0  ;;  %v469_v8 = vadd.f32 %v468_v2, %v2190_v24  ;;  %v470_v9 = vpop.f32.mrb[7].mxu1 }
  0xf3   : > { %v539_v3 = vmax.f32 %v429_v58, 0.0  ;;  %v554_v11 = vmax.f32 %v467_v4, 0.0  ;;  %v471_v12 = vadd.f32 %v470_v9, %v2194_v25 }
  0xf4   : > { %v540_v6 = vmax.f32 %v431_v62, 0.0  ;;  %v555_v15 = vmax.f32 %v469_v8, 0.0 }
  0xf5   : > { %v583_v10 = vpack.c.bf16 %v539_v3, %v537_v1  ;;  %v556_v18 = vmax.f32 %v471_v12, 0.0 }
  0xf6   : > { %v584_v13 = vpack.c.bf16 %v540_v6, %v538_v5  ;;  %v434_v14 = vpop.f32.mrb[8].mxu0  ;;  %v2218_v26 = vpack.c.bf16 %v555_v15, %v553_v7 }
  0xf7   : > { %v435_v16 = vadd.f32 %v434_v14, %v2190_v24  ;;  %v436_v17 = vpop.f32.mrb[9].mxu0  ;;  %v2221_v29 = vpack.c.bf16 %v556_v18, %v554_v11  ;;  %v474_v30 = vpop.f32.mrb[8].mxu1 }
  0xf8   : > { %v437_v20 = vadd.f32 %v436_v17, %v2194_v25  ;;  %v438_v22 = vpop.f32.mrb[10].mxu0  ;;  %851 = vmatprep.mubr.bf16.mxu1 %v584_v13  ;;  %v475_v32 = vadd.f32 %v474_v30, %v2190_v24  ;;  %v476_v33 = vpop.f32.mrb[9].mxu1 }
  0xf9   : > { %v439_v27 = vadd.f32 %v438_v22, %v2190_v24  ;;  %v440_v28 = vpop.f32.mrb[11].mxu0  ;;  %852 = vmatmul.mubr.bf16.gmra.mrb[36].mxu1 %v583_v10  ;;  %v541_v34 = vmax.f32 %v435_v16, 0.0  ;;  %v477_v36 = vadd.f32 %v476_v33, %v2194_v25  ;;  %v478_v37 = vpop.f32.mrb[10].mxu1 }
  0xfa   : > { %v441_v31 = vadd.f32 %v440_v28, %v2194_v25  ;;  %v542_v38 = vmax.f32 %v437_v20, 0.0  ;;  %v557_v40 = vmax.f32 %v475_v32, 0.0  ;;  %v479_v41 = vadd.f32 %v478_v37, %v2190_v24  ;;  %v480_v42 = vpop.f32.mrb[11].mxu1 }
  0xfb   : > { %v543_v35 = vmax.f32 %v439_v27, 0.0  ;;  %v558_v44 = vmax.f32 %v477_v36, 0.0  ;;  %v481_v45 = vadd.f32 %v480_v42, %v2194_v25 }
  0xfc   : > { %v544_v39 = vmax.f32 %v441_v31, 0.0  ;;  %v559_v48 = vmax.f32 %v479_v41, 0.0 }
  0xfd   : > { %v585_v43 = vpack.c.bf16 %v543_v35, %v541_v34  ;;  %v560_v51 = vmax.f32 %v481_v45, 0.0 }
  0xfe   : > { %v586_v46 = vpack.c.bf16 %v544_v39, %v542_v38  ;;  %v444_v47 = vpop.f32.mrb[12].mxu0  ;;  %v2230_v54 = vpack.c.bf16 %v559_v48, %v557_v40 }
  0xff   : > { %v445_v49 = vadd.f32 %v444_v47, %v2190_v24  ;;  %v446_v50 = vpop.f32.mrb[13].mxu0  ;;  %v594_v58 = vpack.c.bf16 %v560_v51, %v558_v44  ;;  %v484_v59 = vpop.f32.mrb[12].mxu1 }
 0x100   : > { %v447_v52 = vadd.f32 %v446_v50, %v2194_v25  ;;  %v448_v53 = vpop.f32.mrb[14].mxu0  ;;  %861 = vmatprep.mubr.bf16.mxu1 %v586_v46  ;;  %v485_v62 = vadd.f32 %v484_v59, %v2190_v24  ;;  %v486_v63 = vpop.f32.mrb[13].mxu1 }
 0x101   : > { %v449_v55 = vadd.f32 %v448_v53, %v2190_v24  ;;  %v450_v56 = vpop.f32.mrb[15].mxu0  ;;  %862 = vmatmul.mubr.bf16.gmra.mrb[40].mxu1 %v585_v43  ;;  %v545_v0 = vmax.f32 %v445_v49, 0.0  ;;  %v487_v3 = vadd.f32 %v486_v63, %v2194_v25  ;;  %v488_v4 = vpop.f32.mrb[14].mxu1 }
 0x102   : > { %v451_v61 = vadd.f32 %v450_v56, %v2194_v25  ;;  %v546_v2 = vmax.f32 %v447_v52, 0.0  ;;  %v561_v6 = vmax.f32 %v485_v62, 0.0  ;;  %v489_v7 = vadd.f32 %v488_v4, %v2190_v24  ;;  %v490_v8 = vpop.f32.mrb[15].mxu1 }
 0x103   : > { %v547_v1 = vmax.f32 %v449_v55, 0.0  ;;  %v562_v10 = vmax.f32 %v487_v3, 0.0  ;;  %v491_v11 = vadd.f32 %v490_v8, %v2194_v25 }
 0x104   : > { %v548_v5 = vmax.f32 %v451_v61, 0.0  ;;  %v563_v13 = vmax.f32 %v489_v7, 0.0 }
 0x105   : > { %v587_v9 = vpack.c.bf16 %v547_v1, %v545_v0  ;;  %v564_v14 = vmax.f32 %v491_v11, 0.0 }
 0x106   : > { %v588_v12 = vpack.c.bf16 %v548_v5, %v546_v2  ;;  %v2238_v15 = vpack.c.bf16 %v563_v13, %v561_v6 }
 0x107   : > { %v596_v16 = vpack.c.bf16 %v564_v14, %v562_v10  ;;  %v494_v17 = vpop.f32.mrb[16].mxu1  ;;  %v1830_v14 = vld [vmem:[%s2593_s5 + $0x78] sm:$0xff]  }
 0x108   : > { %871 = vmatprep.mubr.bf16.mxu1 %v588_v12  ;;  %v495_v18 = vadd.f32 %v494_v17, %v2190_v24  ;;  %v496_v20 = vpop.f32.mrb[17].mxu1 }
 0x109   : > { %872 = vmatmul.mubr.bf16.gmra.mrb[44].mxu1 %v587_v9  ;;  %v497_v22 = vadd.f32 %v496_v20, %v2194_v25  ;;  %v498_v27 = vpop.f32.mrb[18].mxu1 }
 0x10a   : > { %881 = vmatprep.mubr.bf16.mxu1 %v2209_v60  ;;  %v565_v28 = vmax.f32 %v495_v18, 0.0  ;;  %v499_v30 = vadd.f32 %v498_v27, %v2190_v24  ;;  %v500_v31 = vpop.f32.mrb[19].mxu1 }
 0x10b   : > { %v566_v32 = vmax.f32 %v497_v22, 0.0  ;;  %v501_v33 = vadd.f32 %v500_v31, %v2194_v25 }
 0x10c   : > { %v567_v34 = vmax.f32 %v499_v30, 0.0 }
 0x10d   : > { %v568_v35 = vmax.f32 %v501_v33, 0.0 }
 0x10e   : > { %v597_v36 = vpack.c.bf16 %v567_v34, %v565_v28 }
 0x10f   : > { %v598_v37 = vpack.c.bf16 %v568_v35, %v566_v32  ;;  %v504_v60 = vpop.f32.mrb[20].mxu1 }
 0x110   : > { %v505_v38 = vadd.f32 %v504_v60, %v2190_v24  ;;  %v506_v39 = vpop.f32.mrb[21].mxu1 }
 0x111   : > { %882 = vmatmul.mubr.bf16.gmra.mrb[48].mxu1 %v2206_v57  ;;  %v507_v40 = vadd.f32 %v506_v39, %v2194_v25  ;;  %v508_v41 = vpop.f32.mrb[22].mxu1 }
 0x112   : > { %891 = vmatprep.mubr.bf16.mxu1 %v2221_v29  ;;  %v569_v42 = vmax.f32 %v505_v38, 0.0  ;;  %v509_v43 = vadd.f32 %v508_v41, %v2190_v24  ;;  %v510_v44 = vpop.f32.mrb[23].mxu1 }
 0x113   : > { %v570_v45 = vmax.f32 %v507_v40, 0.0  ;;  %v511_v46 = vadd.f32 %v510_v44, %v2194_v25 }
 0x114   : > { %v571_v47 = vmax.f32 %v509_v43, 0.0 }
 0x115   : > { %v572_v48 = vmax.f32 %v511_v46, 0.0 }
 0x116   : > { %v599_v57 = vpack.c.bf16 %v571_v47, %v569_v42 }
 0x117   : > { %v600_v49 = vpack.c.bf16 %v572_v48, %v570_v45  ;;  %v514_v29 = vpop.f32.mrb[24].mxu1 }
 0x118   : > { %v515_v50 = vadd.f32 %v514_v29, %v2190_v24  ;;  %v516_v51 = vpop.f32.mrb[25].mxu1 }
 0x119   : > { %892 = vmatmul.mubr.bf16.gmra.mrb[52].mxu1 %v2218_v26  ;;  %v517_v52 = vadd.f32 %v516_v51, %v2194_v25  ;;  %v518_v53 = vpop.f32.mrb[26].mxu1 }
 0x11a   : > { %901 = vmatprep.mubr.bf16.mxu1 %v594_v58  ;;  %v573_v55 = vmax.f32 %v515_v50, 0.0  ;;  %v519_v56 = vadd.f32 %v518_v53, %v2190_v24  ;;  %v520_v59 = vpop.f32.mrb[27].mxu1 }
 0x11b   : > { %v574_v61 = vmax.f32 %v517_v52, 0.0  ;;  %v521_v62 = vadd.f32 %v520_v59, %v2194_v25 }
 0x11c   : > { %v575_v63 = vmax.f32 %v519_v56, 0.0 }
 0x11d   : > { %v576_v0 = vmax.f32 %v521_v62, 0.0 }
 0x11e   : > { %v601_v1 = vpack.c.bf16 %v575_v63, %v573_v55 }
 0x11f   : > { %v602_v26 = vpack.c.bf16 %v576_v0, %v574_v61  ;;  %v524_v58 = vpop.f32.mrb[28].mxu1 }
 0x120   : > { %v525_v3 = vadd.f32 %v524_v58, %v2190_v24  ;;  %v526_v4 = vpop.f32.mrb[29].mxu1 }
 0x121   : > { %902 = vmatmul.mubr.bf16.gmra.mrb[56].mxu1 %v2230_v54  ;;  %v527_v2 = vadd.f32 %v526_v4, %v2194_v25  ;;  %v528_v5 = vpop.f32.mrb[30].mxu1 }
 0x122   : > { %911 = vmatprep.mubr.bf16.mxu1 %v596_v16  ;;  %v577_v6 = vmax.f32 %v525_v3, 0.0  ;;  %v529_v7 = vadd.f32 %v528_v5, %v2190_v24  ;;  %v530_v8 = vpop.f32.mrb[31].mxu1  ;;  %v1828_v24 = vld [vmem:[%s2593_s5 + $0x70] sm:$0xff]   ;;  %v637_v16 = vld [vmem:[%s2592_s4] sm:$0x3] }
 0x123   : > { %v578_v9 = vmax.f32 %v527_v2, 0.0  ;;  %v531_v10 = vadd.f32 %v530_v8, %v2194_v25  ;;  %v1829_v25 = vld [vmem:[%s2593_s5 + $0x30] sm:$0xff]   ;;  %1678 = vmatprep.subr.bf16.mxu0 %v1828_v24  ;;  %v2279_v17 = vrot.slane %v637_v16, %v325_v21  ;;  %v2283_v18 = vrot.slane %v637_v16, %v329_v23 }
 0x124   : > { %v579_v11 = vmax.f32 %v529_v7, 0.0  ;;  %1679 = vmatpush3.bf16.msra.mxu0 %v1829_v25 }
 0x125   : > { %v580_v12 = vmax.f32 %v531_v10, 0.0  ;;  %1680 = vmatprep.subr.bf16.mxu0 %v1830_v14 }
 0x126   : > { %v603_v13 = vpack.c.bf16 %v579_v11, %v577_v6 }
 0x127   : > { %v604_v54 = vpack.c.bf16 %v580_v12, %v578_v9 }
 0x129   : > { %912 = vmatmul.mubr.bf16.gmra.mrb[60].mxu1 %v2238_v15  ;;  %v1831_v15 = vld [vmem:[%s2593_s5 + $0x38] sm:$0xff]  }
 0x12a   : > { %921 = vmatprep.mubr.bf16.mxu1 %v598_v37  ;;  %1681 = vmatpush3.bf16.msra.mxu0 %v1831_v15 }
 0x131   : > { %922 = vmatmul.mubr.bf16.gmra.mrb[64].mxu1 %v597_v36 }
 0x132   : > { %931 = vmatprep.mubr.bf16.mxu1 %v600_v49 }
 0x139   : > { %932 = vmatmul.mubr.bf16.gmra.mrb[68].mxu1 %v599_v57 }
 0x13a   : > { %941 = vmatprep.mubr.bf16.mxu1 %v602_v26 }
 0x141   : > { %942 = vmatmul.mubr.bf16.gmra.mrb[72].mxu1 %v601_v1 }
 0x142   : > { %951 = vmatprep.mubr.bf16.mxu1 %v604_v54 }
 0x149   : > { %952 = vmatmul.mubr.bf16.gmra.mrb[76].mxu1 %v603_v13 }
 0x1c4   : > { %v843_v20 = vpop.f32.mrb[32].mxu1 }
 0x1c5   : > { %v844_v22 = vadd.f32 %v843_v20, %v2279_v17  ;;  %v845_v27 = vpop.f32.mrb[33].mxu1 }
 0x1c6   : > { %v846_v28 = vadd.f32 %v845_v27, %v2283_v18  ;;  %v847_v30 = vpop.f32.mrb[34].mxu1 }
 0x1c7   : > { %v848_v31 = vadd.f32 %v847_v30, %v2279_v17  ;;  %v849_v32 = vpop.f32.mrb[35].mxu1  ;;  %v962_v34 = vmax.f32 %v844_v22, 0.0 }
 0x1c8   : > { %v850_v33 = vadd.f32 %v849_v32, %v2283_v18  ;;  %v963_v21 = vmax.f32 %v846_v28, 0.0 }
 0x1c9   : > { %v964_v35 = vmax.f32 %v848_v31, 0.0 }
 0x1ca   : > { %v965_v36 = vmax.f32 %v850_v33, 0.0 }
 0x1cb   : > { %v1010_v37 = vpack.c.bf16 %v964_v35, %v962_v34 }
 0x1cc   : > { %v1011_v19 = vpack.c.bf16 %v965_v36, %v963_v21  ;;  %v853_v23 = vpop.f32.mrb[36].mxu1 }
 0x1cd   : > { %v854_v60 = vadd.f32 %v853_v23, %v2279_v17  ;;  %v855_v38 = vpop.f32.mrb[37].mxu1 }
 0x1ce   : > { %v856_v39 = vadd.f32 %v855_v38, %v2283_v18  ;;  %v857_v40 = vpop.f32.mrb[38].mxu1  ;;  %1201 = vmatprep.mubr.bf16.mxu0 %v1011_v19 }
 0x1cf   : > { %v858_v41 = vadd.f32 %v857_v40, %v2279_v17  ;;  %v859_v42 = vpop.f32.mrb[39].mxu1  ;;  %1202 = vmatmul.mubr.bf16.vlgmr.msra.gmra.mrb[16].mxu0 %v1010_v37  ;;  %v966_v44 = vmax.f32 %v854_v60, 0.0 }
 0x1d0   : > { %v860_v43 = vadd.f32 %v859_v42, %v2283_v18  ;;  %v967_v46 = vmax.f32 %v856_v39, 0.0 }
 0x1d1   : > { %v968_v45 = vmax.f32 %v858_v41, 0.0 }
 0x1d2   : > { %v969_v47 = vmax.f32 %v860_v43, 0.0 }
 0x1d3   : > { %v1012_v48 = vpack.c.bf16 %v968_v45, %v966_v44 }
 0x1d4   : > { %v1013_v57 = vpack.c.bf16 %v969_v47, %v967_v46  ;;  %v863_v49 = vpop.f32.mrb[40].mxu1 }
 0x1d5   : > { %v864_v29 = vadd.f32 %v863_v49, %v2279_v17  ;;  %v865_v50 = vpop.f32.mrb[41].mxu1 }
 0x1d6   : > { %v866_v51 = vadd.f32 %v865_v50, %v2283_v18  ;;  %v867_v52 = vpop.f32.mrb[42].mxu1  ;;  %1209 = vmatprep.mubr.bf16.mxu0 %v1013_v57 }
 0x1d7   : > { %v868_v53 = vadd.f32 %v867_v52, %v2279_v17  ;;  %v869_v55 = vpop.f32.mrb[43].mxu1  ;;  %1210 = vmatmul.mubr.bf16.gmra.mrb[20].mxu0 %v1012_v48  ;;  %v970_v59 = vmax.f32 %v864_v29, 0.0 }
 0x1d8   : > { %v870_v56 = vadd.f32 %v869_v55, %v2283_v18  ;;  %v971_v62 = vmax.f32 %v866_v51, 0.0 }
 0x1d9   : > { %v972_v61 = vmax.f32 %v868_v53, 0.0 }
 0x1da   : > { %v973_v63 = vmax.f32 %v870_v56, 0.0 }
 0x1db   : > { %v1014_v0 = vpack.c.bf16 %v972_v61, %v970_v59 }
 0x1dc   : > { %v1015_v1 = vpack.c.bf16 %v973_v63, %v971_v62  ;;  %v873_v26 = vpop.f32.mrb[44].mxu1 }
 0x1dd   : > { %v874_v58 = vadd.f32 %v873_v26, %v2279_v17  ;;  %v875_v3 = vpop.f32.mrb[45].mxu1 }
 0x1de   : > { %v876_v4 = vadd.f32 %v875_v3, %v2283_v18  ;;  %v877_v2 = vpop.f32.mrb[46].mxu1  ;;  %1217 = vmatprep.mubr.bf16.mxu0 %v1015_v1 }
 0x1df   : > { %v878_v5 = vadd.f32 %v877_v2, %v2279_v17  ;;  %v879_v6 = vpop.f32.mrb[47].mxu1  ;;  %1218 = vmatmul.mubr.bf16.gmra.mrb[24].mxu0 %v1014_v0  ;;  %v974_v8 = vmax.f32 %v874_v58, 0.0 }
 0x1e0   : > { %v880_v7 = vadd.f32 %v879_v6, %v2283_v18  ;;  %v975_v10 = vmax.f32 %v876_v4, 0.0 }
 0x1e1   : > { %v976_v9 = vmax.f32 %v878_v5, 0.0 }
 0x1e2   : > { %v977_v11 = vmax.f32 %v880_v7, 0.0 }
 0x1e3   : > { %v1016_v12 = vpack.c.bf16 %v976_v9, %v974_v8 }
 0x1e4   : > { %v1017_v13 = vpack.c.bf16 %v977_v11, %v975_v10  ;;  %v883_v54 = vpop.f32.mrb[48].mxu1 }
 0x1e5   : > { %v884_v24 = vadd.f32 %v883_v54, %v2279_v17  ;;  %v885_v25 = vpop.f32.mrb[49].mxu1 }
 0x1e6   : > { %v886_v14 = vadd.f32 %v885_v25, %v2283_v18  ;;  %v887_v15 = vpop.f32.mrb[50].mxu1  ;;  %1225 = vmatprep.mubr.bf16.mxu0 %v1017_v13 }
 0x1e7   : > { %v888_v16 = vadd.f32 %v887_v15, %v2279_v17  ;;  %v889_v20 = vpop.f32.mrb[51].mxu1  ;;  %1226 = vmatmul.mubr.bf16.gmra.mrb[28].mxu0 %v1016_v12  ;;  %v978_v27 = vmax.f32 %v884_v24, 0.0 }
 0x1e8   : > { %v890_v22 = vadd.f32 %v889_v20, %v2283_v18  ;;  %v979_v30 = vmax.f32 %v886_v14, 0.0 }
 0x1e9   : > { %v980_v28 = vmax.f32 %v888_v16, 0.0 }
 0x1ea   : > { %v981_v31 = vmax.f32 %v890_v22, 0.0 }
 0x1eb   : > { %v1018_v32 = vpack.c.bf16 %v980_v28, %v978_v27 }
 0x1ec   : > { %v1019_v33 = vpack.c.bf16 %v981_v31, %v979_v30  ;;  %v893_v34 = vpop.f32.mrb[52].mxu1 }
 0x1ed   : > { %v894_v35 = vadd.f32 %v893_v34, %v2279_v17  ;;  %v895_v21 = vpop.f32.mrb[53].mxu1 }
 0x1ee   : > { %v896_v36 = vadd.f32 %v895_v21, %v2283_v18  ;;  %v897_v37 = vpop.f32.mrb[54].mxu1  ;;  %1233 = vmatprep.mubr.bf16.mxu0 %v1019_v33 }
 0x1ef   : > { %v898_v19 = vadd.f32 %v897_v37, %v2279_v17  ;;  %v899_v23 = vpop.f32.mrb[55].mxu1  ;;  %1234 = vmatmul.mubr.bf16.gmra.mrb[32].mxu0 %v1018_v32  ;;  %v982_v38 = vmax.f32 %v894_v35, 0.0 }
 0x1f0   : > { %v900_v60 = vadd.f32 %v899_v23, %v2283_v18  ;;  %v983_v40 = vmax.f32 %v896_v36, 0.0 }
 0x1f1   : > { %v984_v39 = vmax.f32 %v898_v19, 0.0 }
 0x1f2   : > { %v985_v41 = vmax.f32 %v900_v60, 0.0 }
 0x1f3   : > { %v1020_v42 = vpack.c.bf16 %v984_v39, %v982_v38 }
 0x1f4   : > { %v1021_v43 = vpack.c.bf16 %v985_v41, %v983_v40  ;;  %v903_v44 = vpop.f32.mrb[56].mxu1 }
 0x1f5   : > { %v904_v45 = vadd.f32 %v903_v44, %v2279_v17  ;;  %v905_v46 = vpop.f32.mrb[57].mxu1 }
 0x1f6   : > { %v906_v47 = vadd.f32 %v905_v46, %v2283_v18  ;;  %v907_v48 = vpop.f32.mrb[58].mxu1  ;;  %1241 = vmatprep.mubr.bf16.mxu0 %v1021_v43 }
 0x1f7   : > { %v908_v57 = vadd.f32 %v907_v48, %v2279_v17  ;;  %v909_v49 = vpop.f32.mrb[59].mxu1  ;;  %1242 = vmatmul.mubr.bf16.gmra.mrb[36].mxu0 %v1020_v42  ;;  %v986_v50 = vmax.f32 %v904_v45, 0.0 }
 0x1f8   : > { %v910_v29 = vadd.f32 %v909_v49, %v2283_v18  ;;  %v987_v52 = vmax.f32 %v906_v47, 0.0 }
 0x1f9   : > { %v988_v51 = vmax.f32 %v908_v57, 0.0 }
 0x1fa   : > { %v989_v53 = vmax.f32 %v910_v29, 0.0 }
 0x1fb   : > { %v1022_v55 = vpack.c.bf16 %v988_v51, %v986_v50 }
 0x1fc   : > { %v1023_v56 = vpack.c.bf16 %v989_v53, %v987_v52  ;;  %v913_v59 = vpop.f32.mrb[60].mxu1 }
 0x1fd   : > { %v914_v61 = vadd.f32 %v913_v59, %v2279_v17  ;;  %v915_v62 = vpop.f32.mrb[61].mxu1 }
 0x1fe   : > { %v916_v63 = vadd.f32 %v915_v62, %v2283_v18  ;;  %v917_v0 = vpop.f32.mrb[62].mxu1  ;;  %1249 = vmatprep.mubr.bf16.mxu0 %v1023_v56 }
 0x1ff   : > { %v918_v1 = vadd.f32 %v917_v0, %v2279_v17  ;;  %v919_v26 = vpop.f32.mrb[63].mxu1  ;;  %1250 = vmatmul.mubr.bf16.gmra.mrb[40].mxu0 %v1022_v55  ;;  %v990_v3 = vmax.f32 %v914_v61, 0.0 }
 0x200   : > { %v920_v58 = vadd.f32 %v919_v26, %v2283_v18  ;;  %v991_v2 = vmax.f32 %v916_v63, 0.0 }
 0x201   : > { %v992_v4 = vmax.f32 %v918_v1, 0.0 }
 0x202   : > { %v993_v5 = vmax.f32 %v920_v58, 0.0 }
 0x203   : > { %v1024_v6 = vpack.c.bf16 %v992_v4, %v990_v3 }
 0x204   : > { %v1025_v7 = vpack.c.bf16 %v993_v5, %v991_v2  ;;  %v923_v8 = vpop.f32.mrb[64].mxu1  ;;  %v2336_v2 = vld [vmem:[%s2594_s6] ss:$0 sm:$0xff] }
 0x205   : > { %v924_v9 = vadd.f32 %v923_v8, %v2279_v17  ;;  %v925_v10 = vpop.f32.mrb[65].mxu1 }
 0x206   : > { %v926_v11 = vadd.f32 %v925_v10, %v2283_v18  ;;  %v927_v12 = vpop.f32.mrb[66].mxu1  ;;  %1257 = vmatprep.mubr.bf16.mxu0 %v1025_v7 }
 0x207   : > { %v928_v13 = vadd.f32 %v927_v12, %v2279_v17  ;;  %v929_v54 = vpop.f32.mrb[67].mxu1  ;;  %1258 = vmatmul.mubr.bf16.gmra.mrb[44].mxu0 %v1024_v6  ;;  %v994_v25 = vmax.f32 %v924_v9, 0.0 }
 0x208   : > { %v930_v24 = vadd.f32 %v929_v54, %v2283_v18  ;;  %v995_v15 = vmax.f32 %v926_v11, 0.0 }
 0x209   : > { %v996_v14 = vmax.f32 %v928_v13, 0.0 }
 0x20a   : > { %v997_v16 = vmax.f32 %v930_v24, 0.0 }
 0x20b   : > { %v1026_v20 = vpack.c.bf16 %v996_v14, %v994_v25 }
 0x20c   : > { %v1027_v22 = vpack.c.bf16 %v997_v16, %v995_v15  ;;  %v933_v27 = vpop.f32.mrb[68].mxu1 }
 0x20d   : > { %v934_v28 = vadd.f32 %v933_v27, %v2279_v17  ;;  %v935_v30 = vpop.f32.mrb[69].mxu1 }
 0x20e   : > { %v936_v31 = vadd.f32 %v935_v30, %v2283_v18  ;;  %v937_v32 = vpop.f32.mrb[70].mxu1  ;;  %1265 = vmatprep.mubr.bf16.mxu0 %v1027_v22 }
 0x20f   : > { %v938_v33 = vadd.f32 %v937_v32, %v2279_v17  ;;  %v939_v34 = vpop.f32.mrb[71].mxu1  ;;  %1266 = vmatmul.mubr.bf16.gmra.mrb[48].mxu0 %v1026_v20  ;;  %v998_v21 = vmax.f32 %v934_v28, 0.0 }
 0x210   : > { %v940_v35 = vadd.f32 %v939_v34, %v2283_v18  ;;  %v999_v37 = vmax.f32 %v936_v31, 0.0 }
 0x211   : > { %v1000_v36 = vmax.f32 %v938_v33, 0.0 }
 0x212   : > { %v1001_v19 = vmax.f32 %v940_v35, 0.0 }
 0x213   : > { %v1028_v23 = vpack.c.bf16 %v1000_v36, %v998_v21 }
 0x214   : > { %v1029_v60 = vpack.c.bf16 %v1001_v19, %v999_v37  ;;  %v943_v38 = vpop.f32.mrb[72].mxu1 }
 0x215   : > { %v944_v39 = vadd.f32 %v943_v38, %v2279_v17  ;;  %v945_v40 = vpop.f32.mrb[73].mxu1 }
 0x216   : > { %v946_v41 = vadd.f32 %v945_v40, %v2283_v18  ;;  %v947_v42 = vpop.f32.mrb[74].mxu1  ;;  %1273 = vmatprep.mubr.bf16.mxu0 %v1029_v60 }
 0x217   : > { %v948_v43 = vadd.f32 %v947_v42, %v2279_v17  ;;  %v949_v44 = vpop.f32.mrb[75].mxu1  ;;  %1274 = vmatmul.mubr.bf16.gmra.mrb[52].mxu0 %v1028_v23  ;;  %v1002_v46 = vmax.f32 %v944_v39, 0.0 }
 0x218   : > { %v950_v45 = vadd.f32 %v949_v44, %v2283_v18  ;;  %v1003_v48 = vmax.f32 %v946_v41, 0.0 }
 0x219   : > { %v1004_v47 = vmax.f32 %v948_v43, 0.0 }
 0x21a   : > { %v1005_v57 = vmax.f32 %v950_v45, 0.0 }
 0x21b   : > { %v1030_v49 = vpack.c.bf16 %v1004_v47, %v1002_v46 }
 0x21c   : > { %v1031_v29 = vpack.c.bf16 %v1005_v57, %v1003_v48  ;;  %v953_v50 = vpop.f32.mrb[76].mxu1 }
 0x21d   : > { %v954_v51 = vadd.f32 %v953_v50, %v2279_v17  ;;  %v955_v52 = vpop.f32.mrb[77].mxu1 }
 0x21e   : > { %v956_v53 = vadd.f32 %v955_v52, %v2283_v18  ;;  %v957_v55 = vpop.f32.mrb[78].mxu1  ;;  %1281 = vmatprep.mubr.bf16.mxu0 %v1031_v29 }
 0x21f   : > { %v958_v56 = vadd.f32 %v957_v55, %v2279_v17  ;;  %v959_v59 = vpop.f32.mrb[79].mxu1  ;;  %1282 = vmatmul.mubr.bf16.gmra.mrb[56].mxu0 %v1030_v49  ;;  %v1006_v62 = vmax.f32 %v954_v51, 0.0 }
 0x220   : > { %v960_v61 = vadd.f32 %v959_v59, %v2283_v18  ;;  %v1007_v0 = vmax.f32 %v956_v53, 0.0 }
 0x221   : > { %v1008_v63 = vmax.f32 %v958_v56, 0.0 }
 0x222   : > { %v1009_v1 = vmax.f32 %v960_v61, 0.0 }
 0x223   : > { %v1032_v26 = vpack.c.bf16 %v1008_v63, %v1006_v62 }
 0x224   : > { %v1033_v58 = vpack.c.bf16 %v1009_v1, %v1007_v0 }
 0x226   : > { %1289 = vmatprep.mubr.bf16.mxu0 %v1033_v58 }
 0x227   : > { %1290 = vmatmul.mubr.bf16.gmra.mrb[60].mxu0 %v1032_v26 }
 0x2a2   : > { %v1682_v3 = vpop.f32.mrb[16].mxu0 }
 0x2a3   : > { %v1683_v4 = vpop.f32.mrb[17].mxu0 }
 0x2a4   : > { %v1684_v17 = vadd.f32 %v1683_v4, %v1682_v3  ;;  %v1685_v5 = vpop.f32.mrb[18].mxu0 }
 0x2a5   : > { %v1686_v6 = vpop.f32.mrb[19].mxu0 }
 0x2a6   : > { %v1687_v7 = vadd.f32 %v1686_v6, %v1685_v5  ;;  %v2339_v18 = vadd.f32 %v1684_v17, %v2336_v2 }
 0x2a8   : > { %1298 = vmax.xlane.f32.xlu0 %v2339_v18  ;;  %v2343_v9 = vadd.f32 %v1687_v7, %v2336_v2 }
 0x2aa   : > { %v1688_v8 = vpop.f32.mrb[20].mxu0 }
 0x2ab   : > { %v1689_v10 = vpop.f32.mrb[21].mxu0 }
 0x2ac   : > { %v1690_v11 = vadd.f32 %v1689_v10, %v1688_v8  ;;  %v1691_v12 = vpop.f32.mrb[22].mxu0  ;;  %1300 = vmax.xlane.f32.xlu0 %v2343_v9 }
 0x2ad   : > { %v1692_v13 = vpop.f32.mrb[23].mxu0 }
 0x2ae   : > { %v1693_v54 = vadd.f32 %v1692_v13, %v1691_v12  ;;  %v2347_v24 = vadd.f32 %v1690_v11, %v2336_v2 }
 0x2b0   : > { %1302 = vmax.xlane.f32.xlu1 %v2347_v24  ;;  %v2351_v14 = vadd.f32 %v1693_v54, %v2336_v2 }
 0x2b2   : > { %v1694_v25 = vpop.f32.mrb[24].mxu0 }
 0x2b3   : > { %v1695_v15 = vpop.f32.mrb[25].mxu0 }
 0x2b4   : > { %v1696_v16 = vadd.f32 %v1695_v15, %v1694_v25  ;;  %v1697_v20 = vpop.f32.mrb[26].mxu0  ;;  %1304 = vmax.xlane.f32.xlu1 %v2351_v14 }
 0x2b5   : > { %v1698_v22 = vpop.f32.mrb[27].mxu0 }
 0x2b6   : > { %v1699_v27 = vadd.f32 %v1698_v22, %v1697_v20  ;;  %v2355_v28 = vadd.f32 %v1696_v16, %v2336_v2 }
 0x2b8   : > { %1306 = vmax.xlane.f32.xlu0 %v2355_v28  ;;  %v2359_v30 = vadd.f32 %v1699_v27, %v2336_v2 }
 0x2ba   : > { %v1700_v31 = vpop.f32.mrb[28].mxu0  ;;  %1308 = vmax.xlane.f32.xlu1 %v2359_v30 }
 0x2bb   : > { %v1701_v32 = vpop.f32.mrb[29].mxu0 }
 0x2bc   : > { %v1702_v33 = vadd.f32 %v1701_v32, %v1700_v31  ;;  %v1703_v34 = vpop.f32.mrb[30].mxu0 }
 0x2bd   : > { %v1704_v35 = vpop.f32.mrb[31].mxu0 }
 0x2be   : > { %v1705_v21 = vadd.f32 %v1704_v35, %v1703_v34  ;;  %v2363_v36 = vadd.f32 %v1702_v33, %v2336_v2 }
 0x2c0   : > { %1310 = vmax.xlane.f32.xlu0 %v2363_v36  ;;  %v2367_v37 = vadd.f32 %v1705_v21, %v2336_v2 }
 0x2c2   : > { %v1706_v19 = vpop.f32.mrb[32].mxu0  ;;  %1312 = vmax.xlane.f32.xlu1 %v2367_v37 }
 0x2c3   : > { %v1707_v23 = vpop.f32.mrb[33].mxu0 }
 0x2c4   : > { %v1708_v60 = vadd.f32 %v1707_v23, %v1706_v19  ;;  %v1709_v38 = vpop.f32.mrb[34].mxu0 }
 0x2c5   : > { %v1710_v39 = vpop.f32.mrb[35].mxu0 }
 0x2c6   : > { %v1711_v40 = vadd.f32 %v1710_v39, %v1709_v38  ;;  %v2371_v41 = vadd.f32 %v1708_v60, %v2336_v2 }
 0x2c8   : > { %1314 = vmax.xlane.f32.xlu0 %v2371_v41  ;;  %v2375_v42 = vadd.f32 %v1711_v40, %v2336_v2 }
 0x2ca   : > { %v1712_v43 = vpop.f32.mrb[36].mxu0  ;;  %1316 = vmax.xlane.f32.xlu1 %v2375_v42 }
 0x2cb   : > { %v1713_v44 = vpop.f32.mrb[37].mxu0 }
 0x2cc   : > { %v1714_v45 = vadd.f32 %v1713_v44, %v1712_v43  ;;  %v1715_v46 = vpop.f32.mrb[38].mxu0 }
 0x2cd   : > { %v1716_v47 = vpop.f32.mrb[39].mxu0 }
 0x2ce   : > { %v1717_v48 = vadd.f32 %v1716_v47, %v1715_v46  ;;  %v2379_v57 = vadd.f32 %v1714_v45, %v2336_v2 }
 0x2d0   : > { %1318 = vmax.xlane.f32.xlu0 %v2379_v57  ;;  %v2383_v49 = vadd.f32 %v1717_v48, %v2336_v2 }
 0x2d2   : > { %v1718_v29 = vpop.f32.mrb[40].mxu0  ;;  %1320 = vmax.xlane.f32.xlu1 %v2383_v49 }
 0x2d3   : > { %v1719_v50 = vpop.f32.mrb[41].mxu0 }
 0x2d4   : > { %v1720_v51 = vadd.f32 %v1719_v50, %v1718_v29  ;;  %v1721_v52 = vpop.f32.mrb[42].mxu0 }
 0x2d5   : > { %v1722_v53 = vpop.f32.mrb[43].mxu0 }
 0x2d6   : > { %v1723_v55 = vadd.f32 %v1722_v53, %v1721_v52  ;;  %v2387_v56 = vadd.f32 %v1720_v51, %v2336_v2 }
 0x2d8   : > { %1322 = vmax.xlane.f32.xlu0 %v2387_v56  ;;  %v2391_v59 = vadd.f32 %v1723_v55, %v2336_v2 }
 0x2da   : > { %v1724_v61 = vpop.f32.mrb[44].mxu0  ;;  %1324 = vmax.xlane.f32.xlu1 %v2391_v59 }
 0x2db   : > { %v1725_v62 = vpop.f32.mrb[45].mxu0 }
 0x2dc   : > { %v1726_v63 = vadd.f32 %v1725_v62, %v1724_v61  ;;  %v1727_v0 = vpop.f32.mrb[46].mxu0 }
 0x2dd   : > { %v1728_v1 = vpop.f32.mrb[47].mxu0 }
 0x2de   : > { %v1729_v26 = vadd.f32 %v1728_v1, %v1727_v0  ;;  %v2395_v58 = vadd.f32 %v1726_v63, %v2336_v2 }
 0x2e0   : > { %1326 = vmax.xlane.f32.xlu0 %v2395_v58  ;;  %v2399_v3 = vadd.f32 %v1729_v26, %v2336_v2 }
 0x2e2   : > { %v1730_v4 = vpop.f32.mrb[48].mxu0  ;;  %1328 = vmax.xlane.f32.xlu1 %v2399_v3 }
 0x2e3   : > { %v1731_v17 = vpop.f32.mrb[49].mxu0 }
 0x2e4   : > { %v1732_v5 = vadd.f32 %v1731_v17, %v1730_v4  ;;  %v1733_v6 = vpop.f32.mrb[50].mxu0 }
 0x2e5   : > { %v1734_v7 = vpop.f32.mrb[51].mxu0 }
 0x2e6   : > { %v1735_v8 = vadd.f32 %v1734_v7, %v1733_v6  ;;  %v2403_v10 = vadd.f32 %v1732_v5, %v2336_v2 }
 0x2e8   : > { %1330 = vmax.xlane.f32.xlu0 %v2403_v10  ;;  %v2407_v11 = vadd.f32 %v1735_v8, %v2336_v2 }
 0x2ea   : > { %v1736_v12 = vpop.f32.mrb[52].mxu0  ;;  %1332 = vmax.xlane.f32.xlu1 %v2407_v11 }
 0x2eb   : > { %v1737_v13 = vpop.f32.mrb[53].mxu0 }
 0x2ec   : > { %v1738_v54 = vadd.f32 %v1737_v13, %v1736_v12  ;;  %v1739_v25 = vpop.f32.mrb[54].mxu0 }
 0x2ed   : > { %v1740_v15 = vpop.f32.mrb[55].mxu0 }
 0x2ee   : > { %v1741_v16 = vadd.f32 %v1740_v15, %v1739_v25  ;;  %v2411_v20 = vadd.f32 %v1738_v54, %v2336_v2 }
 0x2f0   : > { %1334 = vmax.xlane.f32.xlu0 %v2411_v20  ;;  %v2415_v22 = vadd.f32 %v1741_v16, %v2336_v2 }
 0x2f2   : > { %v1742_v27 = vpop.f32.mrb[56].mxu0  ;;  %1336 = vmax.xlane.f32.xlu1 %v2415_v22 }
 0x2f3   : > { %v1743_v31 = vpop.f32.mrb[57].mxu0 }
 0x2f4   : > { %v1744_v32 = vadd.f32 %v1743_v31, %v1742_v27  ;;  %v1745_v33 = vpop.f32.mrb[58].mxu0 }
 0x2f5   : > { %v1746_v34 = vpop.f32.mrb[59].mxu0 }
 0x2f6   : > { %v1747_v35 = vadd.f32 %v1746_v34, %v1745_v33  ;;  %v2419_v21 = vadd.f32 %v1744_v32, %v2336_v2 }
 0x2f8   : > { %1338 = vmax.xlane.f32.xlu0 %v2419_v21  ;;  %v2423_v19 = vadd.f32 %v1747_v35, %v2336_v2 }
 0x2fa   : > { %v1748_v23 = vpop.f32.mrb[60].mxu0  ;;  %1340 = vmax.xlane.f32.xlu1 %v2423_v19 }
 0x2fb   : > { %v1749_v60 = vpop.f32.mrb[61].mxu0 }
 0x2fc   : > { %v1750_v38 = vadd.f32 %v1749_v60, %v1748_v23  ;;  %v1751_v39 = vpop.f32.mrb[62].mxu0 }
 0x2fd   : > { %v1752_v40 = vpop.f32.mrb[63].mxu0 }
 0x2fe   : > { %v1753_v43 = vadd.f32 %v1752_v40, %v1751_v39  ;;  %v2427_v44 = vadd.f32 %v1750_v38, %v2336_v2 }
 0x300   : > { %1342 = vmax.xlane.f32.xlu0 %v2427_v44  ;;  %v2431_v45 = vadd.f32 %v1753_v43, %v2336_v2 }
 0x302   : > { %1344 = vmax.xlane.f32.xlu1 %v2431_v45 }
 0x335   : > { %v1299_v46 = vpop.xlane.xlu0 %1298 }
 0x336   : > { %v1346_v47 = vsub.f32 %v2339_v18, %v1299_v46 }
 0x338   : > { %v1370_v48 = vmul.f32 1.442695, %v1346_v47 }
 0x339   : > { %v1301_v29 = vpop.xlane.xlu0 %1300 }
 0x33a   : > { %1832 = vpow2.f32 %v1370_v48  ;;  %v1347_v50 = vsub.f32 %v2343_v9, %v1301_v29 }
 0x33c   : > { %v1372_v51 = vmul.f32 1.442695, %v1347_v50 }
 0x33d   : > { %v1303_v52 = vpop.xlane.xlu1 %1302 }
 0x33e   : > { %1834 = vpow2.f32 %v1372_v51  ;;  %v1348_v53 = vsub.f32 %v2347_v24, %v1303_v52 }
 0x340   : > { %v1374_v55 = vmul.f32 1.442695, %v1348_v53 }
 0x341   : > { %v1305_v61 = vpop.xlane.xlu1 %1304 }
 0x342   : > { %1836 = vpow2.f32 %v1374_v55  ;;  %v1349_v2 = vsub.f32 %v2351_v14, %v1305_v61 }
 0x344   : > { %v2438_v62 = vpop.eup %1832  ;;  %v1376_v63 = vmul.f32 1.442695, %v1349_v2 }
 0x345   : > { %1418 = vadd.xlane.f32.xlu0 %v2438_v62  ;;  %v1307_v18 = vpop.xlane.xlu0 %1306 }
 0x346   : > { %1838 = vpow2.f32 %v1376_v63  ;;  %v1350_v0 = vsub.f32 %v2355_v28, %v1307_v18 }
 0x347   : > { %v1309_v9 = vpop.xlane.xlu1 %1308 }
 0x348   : > { %v2442_v1 = vpop.eup %1834  ;;  %v1378_v26 = vmul.f32 1.442695, %v1350_v0  ;;  %v1351_v24 = vsub.f32 %v2359_v30, %v1309_v9 }
 0x349   : > { %1420 = vadd.xlane.f32.xlu1 %v2442_v1 }
 0x34a   : > { %1840 = vpow2.f32 %v1378_v26  ;;  %v1380_v4 = vmul.f32 1.442695, %v1351_v24 }
 0x34c   : > { %v2446_v14 = vpop.eup %1836  ;;  %1842 = vpow2.f32 %v1380_v4 }
 0x34d   : > { %1422 = vadd.xlane.f32.xlu0 %v2446_v14  ;;  %v1311_v17 = vpop.xlane.xlu0 %1310 }
 0x34e   : > { %v1352_v5 = vsub.f32 %v2363_v36, %v1311_v17 }
 0x34f   : > { %v1313_v6 = vpop.xlane.xlu1 %1312 }
 0x350   : > { %v2450_v28 = vpop.eup %1838  ;;  %v1382_v7 = vmul.f32 1.442695, %v1352_v5  ;;  %v1353_v8 = vsub.f32 %v2367_v37, %v1313_v6 }
 0x351   : > { %1424 = vadd.xlane.f32.xlu1 %v2450_v28 }
 0x352   : > { %1844 = vpow2.f32 %v1382_v7  ;;  %v1384_v30 = vmul.f32 1.442695, %v1353_v8 }
 0x354   : > { %v2454_v12 = vpop.eup %1840  ;;  %1846 = vpow2.f32 %v1384_v30 }
 0x355   : > { %1426 = vadd.xlane.f32.xlu0 %v2454_v12  ;;  %v1315_v13 = vpop.xlane.xlu0 %1314 }
 0x356   : > { %v2457_v54 = vpop.eup %1842  ;;  %v1354_v36 = vsub.f32 %v2371_v41, %v1315_v13 }
 0x357   : > { %v1317_v25 = vpop.xlane.xlu1 %1316  ;;  %1428 = vadd.xlane.f32.xlu1 %v2457_v54 }
 0x358   : > { %v1386_v15 = vmul.f32 1.442695, %v1354_v36  ;;  %v1355_v37 = vsub.f32 %v2375_v42, %v1317_v25 }
 0x35a   : > { %1848 = vpow2.f32 %v1386_v15  ;;  %v1388_v16 = vmul.f32 1.442695, %v1355_v37 }
 0x35c   : > { %v2462_v27 = vpop.eup %1844  ;;  %1850 = vpow2.f32 %v1388_v16 }
 0x35d   : > { %1430 = vadd.xlane.f32.xlu0 %v2462_v27  ;;  %v1319_v31 = vpop.xlane.xlu0 %1318 }
 0x35e   : > { %v2465_v32 = vpop.eup %1846  ;;  %v1356_v33 = vsub.f32 %v2379_v57, %v1319_v31 }
 0x35f   : > { %v1321_v34 = vpop.xlane.xlu1 %1320  ;;  %1432 = vadd.xlane.f32.xlu1 %v2465_v32 }
 0x360   : > { %v1390_v41 = vmul.f32 1.442695, %v1356_v33  ;;  %v1357_v35 = vsub.f32 %v2383_v49, %v1321_v34 }
 0x362   : > { %1852 = vpow2.f32 %v1390_v41  ;;  %v1392_v42 = vmul.f32 1.442695, %v1357_v35 }
 0x364   : > { %v2470_v23 = vpop.eup %1848  ;;  %1854 = vpow2.f32 %v1392_v42 }
 0x365   : > { %1434 = vadd.xlane.f32.xlu0 %v2470_v23  ;;  %v1323_v60 = vpop.xlane.xlu0 %1322 }
 0x366   : > { %v2473_v38 = vpop.eup %1850  ;;  %v1358_v39 = vsub.f32 %v2387_v56, %v1323_v60 }
 0x367   : > { %v1325_v40 = vpop.xlane.xlu1 %1324  ;;  %1436 = vadd.xlane.f32.xlu1 %v2473_v38 }
 0x368   : > { %v1394_v57 = vmul.f32 1.442695, %v1358_v39  ;;  %v1359_v43 = vsub.f32 %v2391_v59, %v1325_v40 }
 0x36a   : > { %1856 = vpow2.f32 %v1394_v57  ;;  %v1396_v49 = vmul.f32 1.442695, %v1359_v43 }
 0x36c   : > { %v2478_v46 = vpop.eup %1852  ;;  %1858 = vpow2.f32 %v1396_v49 }
 0x36d   : > { %1438 = vadd.xlane.f32.xlu0 %v2478_v46  ;;  %v1327_v47 = vpop.xlane.xlu0 %1326 }
 0x36e   : > { %v2481_v48 = vpop.eup %1854  ;;  %v1360_v29 = vsub.f32 %v2395_v58, %v1327_v47 }
 0x36f   : > { %v1329_v50 = vpop.xlane.xlu1 %1328  ;;  %1440 = vadd.xlane.f32.xlu1 %v2481_v48 }
 0x370   : > { %v1398_v56 = vmul.f32 1.442695, %v1360_v29  ;;  %v1361_v51 = vsub.f32 %v2399_v3, %v1329_v50 }
 0x372   : > { %1860 = vpow2.f32 %v1398_v56  ;;  %v1400_v59 = vmul.f32 1.442695, %v1361_v51 }
 0x374   : > { %v2486_v52 = vpop.eup %1856  ;;  %1862 = vpow2.f32 %v1400_v59 }
 0x375   : > { %1442 = vadd.xlane.f32.xlu0 %v2486_v52  ;;  %v1331_v53 = vpop.xlane.xlu0 %1330 }
 0x376   : > { %v2489_v55 = vpop.eup %1858  ;;  %v1362_v61 = vsub.f32 %v2403_v10, %v1331_v53 }
 0x377   : > { %v1333_v2 = vpop.xlane.xlu1 %1332  ;;  %1444 = vadd.xlane.f32.xlu1 %v2489_v55 }
 0x378   : > { %v1402_v58 = vmul.f32 1.442695, %v1362_v61  ;;  %v1363_v63 = vsub.f32 %v2407_v11, %v1333_v2 }
 0x37a   : > { %1864 = vpow2.f32 %v1402_v58  ;;  %v1404_v3 = vmul.f32 1.442695, %v1363_v63 }
 0x37c   : > { %v2494_v18 = vpop.eup %1860  ;;  %1866 = vpow2.f32 %v1404_v3 }
 0x37d   : > { %1446 = vadd.xlane.f32.xlu0 %v2494_v18  ;;  %v1335_v0 = vpop.xlane.xlu0 %1334 }
 0x37e   : > { %v2497_v9 = vpop.eup %1862  ;;  %v1364_v26 = vsub.f32 %v2411_v20, %v1335_v0 }
 0x37f   : > { %v1337_v24 = vpop.xlane.xlu1 %1336  ;;  %1448 = vadd.xlane.f32.xlu1 %v2497_v9 }
 0x380   : > { %v1406_v10 = vmul.f32 1.442695, %v1364_v26  ;;  %v1365_v4 = vsub.f32 %v2415_v22, %v1337_v24 }
 0x382   : > { %1868 = vpow2.f32 %v1406_v10  ;;  %v1408_v11 = vmul.f32 1.442695, %v1365_v4 }
 0x384   : > { %v2502_v17 = vpop.eup %1864  ;;  %1870 = vpow2.f32 %v1408_v11 }
 0x385   : > { %1450 = vadd.xlane.f32.xlu0 %v2502_v17  ;;  %v1339_v5 = vpop.xlane.xlu0 %1338 }
 0x386   : > { %v2505_v6 = vpop.eup %1866  ;;  %v1366_v7 = vsub.f32 %v2419_v21, %v1339_v5 }
 0x387   : > { %v1341_v8 = vpop.xlane.xlu1 %1340  ;;  %1452 = vadd.xlane.f32.xlu1 %v2505_v6 }
 0x388   : > { %v1410_v20 = vmul.f32 1.442695, %v1366_v7  ;;  %v1367_v30 = vsub.f32 %v2423_v19, %v1341_v8 }
 0x38a   : > { %1872 = vpow2.f32 %v1410_v20  ;;  %v1412_v22 = vmul.f32 1.442695, %v1367_v30 }
 0x38c   : > { %v2510_v13 = vpop.eup %1868  ;;  %1874 = vpow2.f32 %v1412_v22 }
 0x38d   : > { %1454 = vadd.xlane.f32.xlu0 %v2510_v13  ;;  %v1343_v36 = vpop.xlane.xlu0 %1342 }
 0x38e   : > { %v2513_v25 = vpop.eup %1870  ;;  %v1368_v15 = vsub.f32 %v2427_v44, %v1343_v36 }
 0x38f   : > { %v1345_v37 = vpop.xlane.xlu1 %1344  ;;  %1456 = vadd.xlane.f32.xlu1 %v2513_v25 }
 0x390   : > { %v1414_v21 = vmul.f32 1.442695, %v1368_v15  ;;  %v1369_v16 = vsub.f32 %v2431_v45, %v1345_v37 }
 0x392   : > { %1876 = vpow2.f32 %v1414_v21  ;;  %v1416_v19 = vmul.f32 1.442695, %v1369_v16 }
 0x394   : > { %v2518_v31 = vpop.eup %1872  ;;  %1878 = vpow2.f32 %v1416_v19 }
 0x395   : > { %1458 = vadd.xlane.f32.xlu0 %v2518_v31 }
 0x396   : > { %v2521_v33 = vpop.eup %1874 }
 0x397   : > { %1460 = vadd.xlane.f32.xlu1 %v2521_v33 }
 0x39c   : > { %v2524_v34 = vpop.eup %1876 }
 0x39d   : > { %1462 = vadd.xlane.f32.xlu0 %v2524_v34 }
 0x39e   : > { %v2527_v44 = vpop.eup %1878 }
 0x39f   : > { %1464 = vadd.xlane.f32.xlu1 %v2527_v44 }
 0x3d2   : > { %v1419_v45 = vpop.xlane.xlu0 %1418 }
 0x3d3   : > { %1880 = vrcp.f32 %v1419_v45 }
 0x3d6   : > { %v1421_v41 = vpop.xlane.xlu1 %1420 }
 0x3d7   : > { %1882 = vrcp.f32 %v1421_v41 }
 0x3da   : > { %v1423_v35 = vpop.xlane.xlu0 %1422 }
 0x3db   : > { %1884 = vrcp.f32 %v1423_v35 }
 0x3dd   : > { %v1881_v42 = vpop.eup %1880 }
 0x3de   : > { %v1467_v60 = vmul.f32 %v1881_v42, %v2438_v62  ;;  %v1425_v39 = vpop.xlane.xlu1 %1424 }
 0x3df   : > { %1886 = vrcp.f32 %v1425_v39 }
 0x3e0   : > { %1514 = vst [vmem:[%s2535_s18] sm:$0xff] %v1467_v60 }
 0x3e1   : > { %v1883_v40 = vpop.eup %1882 }
 0x3e2   : > { %v1469_v57 = vmul.f32 %v1883_v40, %v2442_v1  ;;  %v1427_v43 = vpop.xlane.xlu0 %1426 }
 0x3e3   : > { %1888 = vrcp.f32 %v1427_v43 }
 0x3e4   : > { %1515 = vst [vmem:[%s2535_s18 + $0x8] sm:$0xff] %v1469_v57  ;;  %v1429_v49 = vpop.xlane.xlu1 %1428 }
 0x3e5   : > { %v1885_v47 = vpop.eup %1884  ;;  %1890 = vrcp.f32 %v1429_v49 }
 0x3e6   : > { %v1471_v29 = vmul.f32 %v1885_v47, %v2446_v14 }
 0x3e8   : > { %1516 = vst [vmem:[%s2535_s18 + $0x10] sm:$0xff] %v1471_v29 }
 0x3e9   : > { %v1887_v50 = vpop.eup %1886 }
 0x3ea   : > { %v1473_v62 = vmul.f32 %v1887_v50, %v2450_v28  ;;  %v1431_v56 = vpop.xlane.xlu0 %1430 }
 0x3eb   : > { %1892 = vrcp.f32 %v1431_v56 }
 0x3ec   : > { %1517 = vst [vmem:[%s2535_s18 + $0x18] sm:$0xff] %v1473_v62  ;;  %v1433_v51 = vpop.xlane.xlu1 %1432 }
 0x3ed   : > { %v1889_v1 = vpop.eup %1888  ;;  %1894 = vrcp.f32 %v1433_v51 }
 0x3ee   : > { %v1475_v59 = vmul.f32 %v1889_v1, %v2454_v12 }
 0x3ef   : > { %v1891_v53 = vpop.eup %1890 }
 0x3f0   : > { %1518 = vst [vmem:[%s2535_s18 + $0x20] sm:$0xff] %v1475_v59  ;;  %v1477_v61 = vmul.f32 %v1891_v53, %v2457_v54 }
 0x3f2   : > { %1519 = vst [vmem:[%s2535_s18 + $0x28] sm:$0xff] %v1477_v61  ;;  %v1435_v14 = vpop.xlane.xlu0 %1434 }
 0x3f3   : > { %1896 = vrcp.f32 %v1435_v14 }
 0x3f4   : > { %v1437_v2 = vpop.xlane.xlu1 %1436 }
 0x3f5   : > { %v1893_v28 = vpop.eup %1892  ;;  %1898 = vrcp.f32 %v1437_v2 }
 0x3f6   : > { %v1479_v58 = vmul.f32 %v1893_v28, %v2462_v27 }
 0x3f7   : > { %v1895_v63 = vpop.eup %1894 }
 0x3f8   : > { %1520 = vst [vmem:[%s2535_s18 + $0x30] sm:$0xff] %v1479_v58  ;;  %v1481_v3 = vmul.f32 %v1895_v63, %v2465_v32 }
 0x3fa   : > { %1521 = vst [vmem:[%s2535_s18 + $0x38] sm:$0xff] %v1481_v3  ;;  %v1439_v12 = vpop.xlane.xlu0 %1438 }
 0x3fb   : > { %1900 = vrcp.f32 %v1439_v12 }
 0x3fc   : > { %v1441_v0 = vpop.xlane.xlu1 %1440 }
 0x3fd   : > { %v1897_v54 = vpop.eup %1896  ;;  %1902 = vrcp.f32 %v1441_v0 }
 0x3fe   : > { %v1483_v26 = vmul.f32 %v1897_v54, %v2470_v23 }
 0x3ff   : > { %v1899_v24 = vpop.eup %1898 }
 0x400   : > { %1522 = vst [vmem:[%s2535_s18 + $0x40] sm:$0xff] %v1483_v26  ;;  %v1485_v10 = vmul.f32 %v1899_v24, %v2473_v38 }
 0x402   : > { %1523 = vst [vmem:[%s2535_s18 + $0x48] sm:$0xff] %v1485_v10  ;;  %v1443_v27 = vpop.xlane.xlu0 %1442 }
 0x403   : > { %1904 = vrcp.f32 %v1443_v27 }
 0x404   : > { %v1445_v4 = vpop.xlane.xlu1 %1444 }
 0x405   : > { %v1901_v32 = vpop.eup %1900  ;;  %1906 = vrcp.f32 %v1445_v4 }
 0x406   : > { %v1487_v11 = vmul.f32 %v1901_v32, %v2478_v46 }
 0x407   : > { %v1903_v5 = vpop.eup %1902 }
 0x408   : > { %1524 = vst [vmem:[%s2535_s18 + $0x50] sm:$0xff] %v1487_v11  ;;  %v1489_v7 = vmul.f32 %v1903_v5, %v2481_v48 }
 0x40a   : > { %1525 = vst [vmem:[%s2535_s18 + $0x58] sm:$0xff] %v1489_v7  ;;  %v1447_v23 = vpop.xlane.xlu0 %1446 }
 0x40b   : > { %1908 = vrcp.f32 %v1447_v23 }
 0x40c   : > { %v1449_v8 = vpop.xlane.xlu1 %1448 }
 0x40d   : > { %v1905_v38 = vpop.eup %1904  ;;  %1910 = vrcp.f32 %v1449_v8 }
 0x40e   : > { %v1491_v20 = vmul.f32 %v1905_v38, %v2486_v52 }
 0x40f   : > { %v1907_v30 = vpop.eup %1906 }
 0x410   : > { %1526 = vst [vmem:[%s2535_s18 + $0x60] sm:$0xff] %v1491_v20  ;;  %v1493_v22 = vmul.f32 %v1907_v30, %v2489_v55 }
 0x412   : > { %1527 = vst [vmem:[%s2535_s18 + $0x68] sm:$0xff] %v1493_v22  ;;  %v1451_v46 = vpop.xlane.xlu0 %1450 }
 0x413   : > { %1912 = vrcp.f32 %v1451_v46 }
 0x414   : > { %v1453_v36 = vpop.xlane.xlu1 %1452 }
 0x415   : > { %v1909_v48 = vpop.eup %1908  ;;  %1914 = vrcp.f32 %v1453_v36 }
 0x416   : > { %v1495_v15 = vmul.f32 %v1909_v48, %v2494_v18 }
 0x417   : > { %v1911_v37 = vpop.eup %1910 }
 0x418   : > { %1528 = vst [vmem:[%s2535_s18 + $0x70] sm:$0xff] %v1495_v15  ;;  %v1497_v21 = vmul.f32 %v1911_v37, %v2497_v9 }
 0x41a   : > { %1529 = vst [vmem:[%s2535_s18 + $0x78] sm:$0xff] %v1497_v21  ;;  %v1455_v52 = vpop.xlane.xlu0 %1454 }
 0x41b   : > { %1916 = vrcp.f32 %v1455_v52 }
 0x41c   : > { %v1457_v16 = vpop.xlane.xlu1 %1456 }
 0x41d   : > { %v1913_v55 = vpop.eup %1912  ;;  %1918 = vrcp.f32 %v1457_v16 }
 0x41e   : > { %v1499_v19 = vmul.f32 %v1913_v55, %v2502_v17 }
 0x41f   : > { %v1915_v45 = vpop.eup %1914 }
 0x420   : > { %1530 = vst [vmem:[%s2535_s18 + $0x80] sm:$0xff] %v1499_v19  ;;  %v1501_v41 = vmul.f32 %v1915_v45, %v2505_v6 }
 0x422   : > { %1531 = vst [vmem:[%s2535_s18 + $0x88] sm:$0xff] %v1501_v41  ;;  %v1459_v18 = vpop.xlane.xlu0 %1458 }
 0x423   : > { %1920 = vrcp.f32 %v1459_v18 }
 0x424   : > { %v1461_v35 = vpop.xlane.xlu1 %1460 }
 0x425   : > { %v1917_v9 = vpop.eup %1916  ;;  %1922 = vrcp.f32 %v1461_v35 }
 0x426   : > { %v1503_v42 = vmul.f32 %v1917_v9, %v2510_v13 }
 0x427   : > { %v1919_v60 = vpop.eup %1918 }
 0x428   : > { %1532 = vst [vmem:[%s2535_s18 + $0x90] sm:$0xff] %v1503_v42  ;;  %v1505_v39 = vmul.f32 %v1919_v60, %v2513_v25 }
 0x42a   : > { %1533 = vst [vmem:[%s2535_s18 + $0x98] sm:$0xff] %v1505_v39  ;;  %v1463_v17 = vpop.xlane.xlu0 %1462 }
 0x42b   : > { %1924 = vrcp.f32 %v1463_v17 }
 0x42c   : > { %v1465_v6 = vpop.xlane.xlu1 %1464 }
 0x42d   : > { %v1921_v40 = vpop.eup %1920  ;;  %1926 = vrcp.f32 %v1465_v6 }
 0x42e   : > { %v1507_v57 = vmul.f32 %v1921_v40, %v2518_v31 }
 0x42f   : > { %v1923_v43 = vpop.eup %1922 }
 0x430   : > { %1534 = vst [vmem:[%s2535_s18 + $0xa0] sm:$0xff] %v1507_v57  ;;  %v1509_v49 = vmul.f32 %v1923_v43, %v2521_v33 }
 0x432   : > { %1535 = vst [vmem:[%s2535_s18 + $0xa8] sm:$0xff] %v1509_v49 }
 0x435   : > { %v1925_v13 = vpop.eup %1924 }
 0x436   : > { %v1511_v47 = vmul.f32 %v1925_v13, %v2524_v34 }
 0x437   : > { %v1927_v29 = vpop.eup %1926 }
 0x438   : > { %1536 = vst [vmem:[%s2535_s18 + $0xb0] sm:$0xff] %v1511_v47  ;;  %v1513_v25 = vmul.f32 %v1927_v29, %v2527_v44 }
 0x43a   : > { %1537 = vst [vmem:[%s2535_s18 + $0xb8] sm:$0xff] %v1513_v25 }
 0x43b PF: > { %s17_s24 = sadd.s32 1, %s1934_s24  }
 0x43c   : > { %p14_p4 = scmp.ge.s32.totalorder %s17_s24, 4  }
 0x43e   :  { %16 = sbr.rel (!%p14_p4) target bundleno = 1 (0x1), region = 78 }

</bundles_post_ra>
